<compile_context>
chip_gen: v7x
topology: tpu7x:2x2x1
jax: 0.10.0
libtpu: 0.0.40
codegen_flags: <defaults>
</compile_context>

<pallas_src>
import functools
import math

import jax
import jax.numpy as jnp
from jax.experimental import pallas as pl
from jax.experimental.pallas import tpu as pltpu


def spectral_kernel(q_ref, k_ref, v_ref, cfs_ref, wf_ref, wi_ref, o_ref, *,
                    f_valid, exp_dtype):
    # q_ref : (T, L, E) bf16  row-normalized queries
    # k_ref : (T, E, L) bf16  row-normalized keys, pre-transposed on the host
    # v_ref : (T, D, L) bf16  values (time last)
    # cfs_ref: (L, Fp)  bf16  scale * cos(2*pi*n*f/L), zero columns for f >= f_valid
    # wf_ref : (L, 2Fp) bf16  [cos | -sin]  (fused forward rfft)
    # wi_ref : (2Fp, L) bf16  [ci ; si]     (fused Hermitian irfft)
    qh = q_ref[...]
    khT = k_ref[...]
    v = v_ref[...]
    cfs = cfs_ref[...]
    wf = wf_ref[...]
    wi = wi_ref[...]

    T, L, _ = qh.shape
    D = v.shape[1]
    Fp = cfs.shape[-1]

    # --- exp(cosine-similarity) interaction, (T, L, L): batched A@B, no transpose ---
    qk = jnp.einsum('tle,tes->tls', qh, khT, preferred_element_type=jnp.float32)
    inter = jnp.exp(qk.astype(exp_dtype)).astype(jnp.bfloat16)

    # --- scale * Re(rfft(inter)): single 2-D matmul with M = T*L vs shared DFT ---
    logits = jnp.dot(inter.reshape(T * L, L), cfs,
                     preferred_element_type=jnp.float32).reshape(T, L, Fp)

    # Additive -inf bias for padded frequency columns (computed once, O(Fp)).
    col = jax.lax.broadcasted_iota(jnp.int32, (1, 1, Fp), 2)
    fbias = jnp.where(col < f_valid, 0.0, -1e30).astype(jnp.float32)

    # --- softmax over F, sum over L, softmax over F -> A: (T, 1, Fp) ---
    logits = logits + fbias
    e1 = jnp.exp(logits - jnp.max(logits, axis=-1, keepdims=True))
    sm1 = e1 * pl.reciprocal(jnp.sum(e1, axis=-1, keepdims=True), approx=True)
    s = jnp.sum(sm1, axis=1, keepdims=True) + fbias
    e2 = jnp.exp(s - jnp.max(s, axis=-1, keepdims=True))
    A = e2 * pl.reciprocal(jnp.sum(e2, axis=-1, keepdims=True), approx=True)
    # TODO(synk): nn.Dropout(0.1) on A is identity in eval mode; no stochastic drop.

    # --- fused rfft(values): single matmul with M = T*D; cols [0:Fp]=Re, [Fp:2Fp]=Im ---
    vspec = jnp.dot(v.reshape(T * D, L), wf,
                    preferred_element_type=jnp.float32).reshape(T, D, 2 * Fp)

    # --- reweight only the real half by A, keep imag, fused irfft (M = T*D) ---
    spec = jnp.concatenate([A * vspec[..., :Fp], vspec[..., Fp:]],
                           axis=-1).astype(jnp.bfloat16)
    out = jnp.dot(spec.reshape(T * D, 2 * Fp), wi,
                  preferred_element_type=jnp.float32).reshape(T, D, L)
    o_ref[...] = out.astype(o_ref.dtype)


def _dft_matrices(L, F_, Fp, scale):
    """Forward/inverse real-DFT matrices, zero-padded to Fp and fused, in bf16."""
    n = jnp.arange(L, dtype=jnp.float32)[:, None]
    f = jnp.arange(F_, dtype=jnp.float32)[None, :]
    ang = 2.0 * jnp.pi * n * f / L                                   # (L, F_)
    cf = jnp.zeros((L, Fp), jnp.float32).at[:, :F_].set(jnp.cos(ang))
    sf = jnp.zeros((L, Fp), jnp.float32).at[:, :F_].set(-jnp.sin(ang))
    w = jnp.full((F_,), 2.0, jnp.float32).at[0].set(1.0)
    if L % 2 == 0:
        w = w.at[-1].set(1.0)
    ci = jnp.zeros((Fp, L), jnp.float32).at[:F_].set((w[:, None] / L) * jnp.cos(ang.T))
    si = jnp.zeros((Fp, L), jnp.float32).at[:F_].set(-(w[:, None] / L) * jnp.sin(ang.T))
    cfs = (scale * cf).astype(jnp.bfloat16)                          # scale folded in
    wf = jnp.concatenate([cf, sf], axis=1).astype(jnp.bfloat16)      # (L, 2Fp)
    wi = jnp.concatenate([ci, si], axis=0).astype(jnp.bfloat16)      # (2Fp, L)
    return cfs, wf, wi


def _chip_info():
    """(vmem_capacity_bytes, device_kind lowercase) with safe fallbacks."""
    try:
        vmem_cap = int(getattr(pltpu.get_tpu_info(), "vmem_capacity_bytes",
                               128 * 1024 * 1024))
    except Exception:
        vmem_cap = 128 * 1024 * 1024
    try:
        kind = jax.devices()[0].device_kind.lower()
    except Exception:
        kind = ""
    return vmem_cap, kind


def spectral_interaction(queries, keys, values, attn_mask=None, factor=1, scale=None):
    """Matches SpectralInteraction.forward (eval mode). Returns (V, None), V: (B, L, D, H)."""
    del attn_mask, factor
    B, L, H, E = queries.shape
    _, S, _, D = values.shape

    if L > S:
        # Reference pads keys/values with zeros; our eps-normalization keeps this finite
        # (the PyTorch reference produces 0/0 -> NaN columns on this path).
        values = jnp.concatenate(
            [values, jnp.zeros((B, L - S, H, D), values.dtype)], axis=1)
        keys = jnp.concatenate(
            [keys, jnp.zeros((B, L - S, H, E), keys.dtype)], axis=1)
    else:
        values = values[:, :L]
        keys = keys[:, :L]

    BH = B * H
    sc = float(scale) if scale is not None else 1.0 / math.sqrt(E)
    F_ = L // 2 + 1
    Fp = ((F_ + 127) // 128) * 128            # lane-dense padded frequency count
    cfs, wf, wi = _dft_matrices(L, F_, Fp, sc)

    # --- layout glue + host-side normalization (XLA); kernel inputs are bf16 ---
    q = jnp.transpose(queries, (0, 2, 1, 3)).reshape(BH, L, E).astype(jnp.float32)
    k = jnp.transpose(keys, (0, 2, 1, 3)).reshape(BH, L, E).astype(jnp.float32)
    qh = (q * jax.lax.rsqrt(jnp.sum(q * q, -1, keepdims=True) + 1e-12)
          ).astype(jnp.bfloat16)                                     # (BH, L, E)
    khT = jnp.transpose(
        (k * jax.lax.rsqrt(jnp.sum(k * k, -1, keepdims=True) + 1e-12)
         ).astype(jnp.bfloat16), (0, 2, 1))                          # (BH, E, L)
    v = jnp.transpose(values, (0, 2, 3, 1)).reshape(BH, D, L).astype(jnp.bfloat16)

    # --- generation-aware heads-per-step T and VMEM limit ---
    vmem_cap, kind = _chip_info()
    small_vmem = (vmem_cap <= 80 * 1024 * 1024) or ("v7" in kind)    # v7x: 64 MiB, 2 TCs
    budget = (10 if small_vmem else 20) * 1024 * 1024                # live intermediates
    vmem_limit = (30 if small_vmem else 96) * 1024 * 1024
    per_head_bytes = (
        4 * (L * L + 3 * L * Fp + 2 * D * Fp + 3 * D * L)   # f32 intermediates + out dbl-buf
        + 2 * (L * L + 2 * D * Fp)                          # bf16 inter / spec copies
        + 4 * (2 * L * E + D * L))                          # bf16 double-buffered inputs
    T = max(1, min(32, budget // max(per_head_bytes, 1), BH))
    if small_vmem and BH >= 2:
        T = min(T, max(1, BH // 2))          # keep >=2 grid steps only on 2-TC parts
    n_blk = (BH + T - 1) // T
    BH_pad = n_blk * T
    if BH_pad > BH:
        pad = ((0, BH_pad - BH), (0, 0), (0, 0))
        qh, khT, v = jnp.pad(qh, pad), jnp.pad(khT, pad), jnp.pad(v, pad)

    # bf16 EUP only exists on v6e/v7x; keep the interaction exp in f32 elsewhere.
    exp_dtype = jnp.bfloat16 if ("v6" in kind or "v7" in kind) else jnp.float32

    flops = 2 * BH_pad * (L * L * E + L * L * Fp + 4 * D * L * Fp)
    transcendentals = BH_pad * (L * L + L * Fp + Fp + 2 * L)
    bytes_accessed = (2 * (qh.size + khT.size + v.size) + 4 * BH_pad * D * L
                      + 2 * (cfs.size + wf.size + wi.size))
    cost = pl.CostEstimate(flops=int(flops), transcendentals=int(transcendentals),
                           bytes_accessed=int(bytes_accessed))

    kern = functools.partial(spectral_kernel, f_valid=F_, exp_dtype=exp_dtype)

    def run(single_buffer_consts):
        def const_spec(shape):
            idx = lambda i: (0,) * len(shape)
            if single_buffer_consts:
                return pl.BlockSpec(shape, idx, pipeline_mode=pl.Buffered(1))
            return pl.BlockSpec(shape, idx)

        return pl.pallas_call(
            kern,
            out_shape=jax.ShapeDtypeStruct((BH_pad, D, L), jnp.float32),
            grid_spec=pltpu.PrefetchScalarGridSpec(
                num_scalar_prefetch=0,
                grid=(n_blk,),
                in_specs=[
                    pl.BlockSpec((T, L, E), lambda i: (i, 0, 0)),    # qh (bf16)
                    pl.BlockSpec((T, E, L), lambda i: (i, 0, 0)),    # khT (bf16)
                    pl.BlockSpec((T, D, L), lambda i: (i, 0, 0)),    # v  (bf16)
                    const_spec((L, Fp)),                             # scaled fwd cos
                    const_spec((L, 2 * Fp)),                         # fused fwd DFT
                    const_spec((2 * Fp, L)),                         # fused inv DFT
                ],
                out_specs=pl.BlockSpec((T, D, L), lambda i: (i, 0, 0)),
            ),
            compiler_params=pltpu.CompilerParams(
                dimension_semantics=("parallel",),
                vmem_limit_bytes=vmem_limit),
            cost_estimate=cost,
        )(qh, khT, v, cfs, wf, wi)

    try:
        out = run(True)
    except Exception:
        # Running JAX does not accept single-buffer pipeline_mode; use default buffering.
        out = run(False)

    # (BH, D, L) -> (B, H, D, L) -> (B, L, D, H), same as torch V.permute(0, 3, 2, 1)
    V = jnp.transpose(out[:BH].reshape(B, H, D, L), (0, 3, 2, 1))
    return V, None


def _reference(queries, keys, values, scale=None):
    """Pure-JAX f32 reference mirroring the PyTorch forward (eval mode, L <= S path)."""
    B, L, H, E = queries.shape
    values = values[:, :L]
    keys = keys[:, :L]
    q = jnp.transpose(queries, (0, 2, 1, 3)).astype(jnp.float32)
    k = jnp.transpose(keys, (0, 2, 1, 3)).astype(jnp.float32)
    qn = jnp.linalg.norm(q, axis=-1, keepdims=True)
    kn = jnp.linalg.norm(k, axis=-1, keepdims=True)
    num = jnp.einsum('bhle,bhse->bhls', q, k)
    inter = jnp.exp(num / (qn * jnp.swapaxes(kn, -1, -2)))
    inter_fft = jnp.fft.rfft(inter, axis=-1).real
    v_fft = jnp.fft.rfft(jnp.transpose(values, (0, 2, 3, 1)).astype(jnp.float32), axis=-1)
    sc = scale if scale is not None else 1.0 / math.sqrt(E)
    sm1 = jax.nn.softmax(sc * inter_fft, axis=-1)
    A = jax.nn.softmax(jnp.sum(sm1, axis=-2), axis=-1)[:, :, None, :]
    V = jnp.fft.irfft(A * v_fft.real + 1j * v_fft.imag, n=L, axis=-1)
    return jnp.transpose(V, (0, 3, 2, 1))


if __name__ == "__main__":
    key = jax.random.PRNGKey(0)
    kq, kk_, kv = jax.random.split(key, 3)
    B, L, H, E = 2, 8, 4, 16   # queries: (B, L, H, E); keys/values same L; D == E
    queries = jax.random.normal(kq, (B, L, H, E), jnp.float32)
    keys = jax.random.normal(kk_, (B, L, H, E), jnp.float32)
    values = jax.random.normal(kv, (B, L, H, E), jnp.float32)

    V, attn = spectral_interaction(queries, keys, values, attn_mask=None)
    V = jax.block_until_ready(V)
    assert V.shape == (B, L, E, H), V.shape
    assert attn is None

    V_ref = jax.block_until_ready(_reference(queries, keys, values))
    # Tolerance sized for bf16 MXU operands / bf16 DFT matrices (f32 accumulation).
    if not jnp.allclose(V, V_ref, atol=1e-1, rtol=1e-1):
        raise AssertionError("Pallas kernel output mismatch vs JAX reference")

    print("KERNEL_OK")
</pallas_src>

<mosaic_0001>
module attributes {stable_mosaic.version = 11 : i64} {
  func.func @spectral_kernel(%arg0: i32, %arg1: memref<8x8x16xbf16, #tpu.memory_space<vmem>>, %arg2: memref<8x16x8xbf16, #tpu.memory_space<vmem>>, %arg3: memref<8x16x8xbf16, #tpu.memory_space<vmem>>, %arg4: memref<8x128xbf16, #tpu.memory_space<vmem>>, %arg5: memref<8x256xbf16, #tpu.memory_space<vmem>>, %arg6: memref<256x8xbf16, #tpu.memory_space<vmem>>, %arg7: memref<8x16x8xf32, #tpu.memory_space<vmem>>) attributes {dimension_semantics = [#tpu.dimension_semantics<parallel>], iteration_bounds = array<i64: 1>, scalar_prefetch = 0 : i64, scratch_operands = 0 : i64, tpu.core_type = #tpu.core_type<tc>, window_params = [{transform_indices = @transform_0, window_bounds = array<i64: 8, 8, 16>}, {transform_indices = @transform_1, window_bounds = array<i64: 8, 16, 8>}, {transform_indices = @transform_2, window_bounds = array<i64: 8, 16, 8>}, {pipeline_mode = #tpu.pipeline_mode<synchronous>, transform_indices = @transform_3, window_bounds = array<i64: 8, 128>}, {pipeline_mode = #tpu.pipeline_mode<synchronous>, transform_indices = @transform_4, window_bounds = array<i64: 8, 256>}, {pipeline_mode = #tpu.pipeline_mode<synchronous>, transform_indices = @transform_5, window_bounds = array<i64: 256, 8>}, {transform_indices = @transform_6, window_bounds = array<i64: 8, 16, 8>}]} {
    %c0 = arith.constant 0 : index
    %c0_0 = arith.constant 0 : index
    %c0_1 = arith.constant 0 : index
    %0 = vector.load %arg1[%c0, %c0_0, %c0_1] : memref<8x8x16xbf16, #tpu.memory_space<vmem>>, vector<8x8x16xbf16>
    %c0_2 = arith.constant 0 : index
    %c0_3 = arith.constant 0 : index
    %c0_4 = arith.constant 0 : index
    %1 = vector.load %arg2[%c0_2, %c0_3, %c0_4] : memref<8x16x8xbf16, #tpu.memory_space<vmem>>, vector<8x16x8xbf16>
    %c0_5 = arith.constant 0 : index
    %c0_6 = arith.constant 0 : index
    %c0_7 = arith.constant 0 : index
    %2 = vector.load %arg3[%c0_5, %c0_6, %c0_7] : memref<8x16x8xbf16, #tpu.memory_space<vmem>>, vector<8x16x8xbf16>
    %c0_8 = arith.constant 0 : index
    %c0_9 = arith.constant 0 : index
    %3 = vector.load %arg4[%c0_8, %c0_9] : memref<8x128xbf16, #tpu.memory_space<vmem>>, vector<8x128xbf16>
    %c0_10 = arith.constant 0 : index
    %c0_11 = arith.constant 0 : index
    %4 = vector.load %arg5[%c0_10, %c0_11] : memref<8x256xbf16, #tpu.memory_space<vmem>>, vector<8x256xbf16>
    %c0_12 = arith.constant 0 : index
    %c0_13 = arith.constant 0 : index
    %5 = vector.load %arg6[%c0_12, %c0_13] : memref<256x8xbf16, #tpu.memory_space<vmem>>, vector<256x8xbf16>
    "tpu.trace_start"() <{level = 10 : i32, message = "tle,tes->tls"}> : () -> ()
    %cst = arith.constant dense<0.000000e+00> : vector<8x8x8xf32>
    %6 = tpu.matmul %0, %1, %cst {dimension_numbers = #tpu.dot_dimension_numbers<[2], [1], [1], [2], [0, 0, 0, 1, 1, 2], [0], [0]>} : vector<8x8x16xbf16>, vector<8x16x8xbf16>, vector<8x8x8xf32> -> vector<8x8x8xf32>
    "tpu.trace_stop"() : () -> ()
    %7 = math.exp %6 : vector<8x8x8xf32>
    %8 = arith.truncf %7 : vector<8x8x8xf32> to vector<8x8x8xbf16>
    %9 = vector.shape_cast %8 : vector<8x8x8xbf16> to vector<64x8xbf16>
    %cst_14 = arith.constant dense<0.000000e+00> : vector<64x128xf32>
    %10 = tpu.matmul %9, %3, %cst_14 {dimension_numbers = #tpu.dot_dimension_numbers<[1], [0], [0], [1], [0, 0, 1, 1], [], []>} : vector<64x8xbf16>, vector<8x128xbf16>, vector<64x128xf32> -> vector<64x128xf32>
    %11 = vector.shape_cast %10 : vector<64x128xf32> to vector<8x8x128xf32>
    %12 = tpu.iota {dimensions = array<i32: 2>} : vector<1x1x128xi32>
    %c5_i32 = arith.constant 5 : i32
    %13 = vector.broadcast %c5_i32 : i32 to vector<1x1x128xi32>
    %14 = arith.cmpi slt, %12, %13 : vector<1x1x128xi32>
    %cst_15 = arith.constant 0.000000e+00 : f32
    %cst_16 = arith.constant -1.000000e+30 : f32
    %15 = vector.broadcast %cst_15 : f32 to vector<1x1x128xf32>
    %16 = vector.broadcast %cst_16 : f32 to vector<1x1x128xf32>
    %17 = arith.select %14, %15, %16 : vector<1x1x128xi1>, vector<1x1x128xf32>
    %18 = vector.broadcast %17 : vector<1x1x128xf32> to vector<8x8x128xf32>
    %19 = arith.addf %11, %18 : vector<8x8x128xf32>
    %cst_17 = arith.constant dense<0xFF800000> : vector<8x8xf32>
    %20 = vector.multi_reduction <maximumf>, %19, %cst_17 [2] : vector<8x8x128xf32> to vector<8x8xf32>
    %21 = vector.shape_cast %20 : vector<8x8xf32> to vector<8x8x1xf32>
    %22 = vector.broadcast %21 : vector<8x8x1xf32> to vector<8x8x128xf32>
    %23 = arith.subf %19, %22 : vector<8x8x128xf32>
    %24 = math.exp %23 : vector<8x8x128xf32>
    %cst_18 = arith.constant dense<0.000000e+00> : vector<8x8xf32>
    %25 = vector.multi_reduction <add>, %24, %cst_18 [2] : vector<8x8x128xf32> to vector<8x8xf32>
    %26 = vector.shape_cast %25 : vector<8x8xf32> to vector<8x8x1xf32>
    %27 = tpu.reciprocal %26 {approx = true} : vector<8x8x1xf32> -> vector<8x8x1xf32>
    %28 = vector.broadcast %27 : vector<8x8x1xf32> to vector<8x8x128xf32>
    %29 = arith.mulf %24, %28 : vector<8x8x128xf32>
    %cst_19 = arith.constant dense<0.000000e+00> : vector<8x128xf32>
    %30 = vector.multi_reduction <add>, %29, %cst_19 [1] : vector<8x8x128xf32> to vector<8x128xf32>
    %31 = vector.shape_cast %30 : vector<8x128xf32> to vector<8x1x128xf32>
    %32 = vector.broadcast %17 : vector<1x1x128xf32> to vector<8x1x128xf32>
    %33 = arith.addf %31, %32 : vector<8x1x128xf32>
    %cst_20 = arith.constant dense<0xFF800000> : vector<8x1xf32>
    %34 = vector.multi_reduction <maximumf>, %33, %cst_20 [2] : vector<8x1x128xf32> to vector<8x1xf32>
    %35 = vector.shape_cast %34 : vector<8x1xf32> to vector<8x1x1xf32>
    %36 = vector.broadcast %35 : vector<8x1x1xf32> to vector<8x1x128xf32>
    %37 = arith.subf %33, %36 : vector<8x1x128xf32>
    %38 = math.exp %37 : vector<8x1x128xf32>
    %cst_21 = arith.constant dense<0.000000e+00> : vector<8x1xf32>
    %39 = vector.multi_reduction <add>, %38, %cst_21 [2] : vector<8x1x128xf32> to vector<8x1xf32>
    %40 = vector.shape_cast %39 : vector<8x1xf32> to vector<8x1x1xf32>
    %41 = tpu.reciprocal %40 {approx = true} : vector<8x1x1xf32> -> vector<8x1x1xf32>
    %42 = vector.broadcast %41 : vector<8x1x1xf32> to vector<8x1x128xf32>
    %43 = arith.mulf %38, %42 : vector<8x1x128xf32>
    %44 = vector.shape_cast %2 : vector<8x16x8xbf16> to vector<128x8xbf16>
    %cst_22 = arith.constant dense<0.000000e+00> : vector<128x256xf32>
    %45 = tpu.matmul %44, %4, %cst_22 {dimension_numbers = #tpu.dot_dimension_numbers<[1], [0], [0], [1], [0, 0, 1, 1], [], []>} : vector<128x8xbf16>, vector<8x256xbf16>, vector<128x256xf32> -> vector<128x256xf32>
    %46 = vector.shape_cast %45 : vector<128x256xf32> to vector<8x16x256xf32>
    %47 = vector.extract_strided_slice %46 {offsets = [0, 0, 0], sizes = [8, 16, 128], strides = [1, 1, 1]} : vector<8x16x256xf32> to vector<8x16x128xf32>
    %48 = vector.broadcast %43 : vector<8x1x128xf32> to vector<8x16x128xf32>
    %49 = arith.mulf %48, %47 : vector<8x16x128xf32>
    %50 = vector.extract_strided_slice %46 {offsets = [0, 0, 128], sizes = [8, 16, 128], strides = [1, 1, 1]} : vector<8x16x256xf32> to vector<8x16x128xf32>
    %51 = tpu.concatenate %49, %50 in 2 : vector<8x16x128xf32>, vector<8x16x128xf32> -> vector<8x16x256xf32>
    %52 = arith.truncf %51 : vector<8x16x256xf32> to vector<8x16x256xbf16>
    %53 = vector.shape_cast %52 : vector<8x16x256xbf16> to vector<128x256xbf16>
    %cst_23 = arith.constant dense<0.000000e+00> : vector<128x8xf32>
    %54 = tpu.matmul %53, %5, %cst_23 {dimension_numbers = #tpu.dot_dimension_numbers<[1], [0], [0], [1], [0, 0, 1, 1], [], []>} : vector<128x256xbf16>, vector<256x8xbf16>, vector<128x8xf32> -> vector<128x8xf32>
    %55 = vector.shape_cast %54 : vector<128x8xf32> to vector<8x16x8xf32>
    %c0_24 = arith.constant 0 : index
    %c0_25 = arith.constant 0 : index
    %c0_26 = arith.constant 0 : index
    %56 = vector.load %arg7[%c0_24, %c0_25, %c0_26] : memref<8x16x8xf32, #tpu.memory_space<vmem>>, vector<8x16x8xf32>
    tpu.vector_store %arg7[%c0_24, %c0_25, %c0_26], %55 {strides = array<i32>} : memref<8x16x8xf32, #tpu.memory_space<vmem>>, vector<8x16x8xf32>,
    return
  }
  func.func @transform_0(%arg0: i32) -> (i32, i32, i32) {
    %c0_i32 = arith.constant 0 : i32
    %c0_i32_0 = arith.constant 0 : i32
    %c0_i32_1 = arith.constant 0 : i32
    return %arg0, %c0_i32, %c0_i32_0 : i32, i32, i32
  }
  func.func @transform_1(%arg0: i32) -> (i32, i32, i32) {
    %c0_i32 = arith.constant 0 : i32
    %c0_i32_0 = arith.constant 0 : i32
    %c0_i32_1 = arith.constant 0 : i32
    return %arg0, %c0_i32, %c0_i32_0 : i32, i32, i32
  }
  func.func @transform_2(%arg0: i32) -> (i32, i32, i32) {
    %c0_i32 = arith.constant 0 : i32
    %c0_i32_0 = arith.constant 0 : i32
    %c0_i32_1 = arith.constant 0 : i32
    return %arg0, %c0_i32, %c0_i32_0 : i32, i32, i32
  }
  func.func @transform_3(%arg0: i32) -> (i32, i32) {
    %c0_i32 = arith.constant 0 : i32
    %c0_i32_0 = arith.constant 0 : i32
    %c0_i32_1 = arith.constant 0 : i32
    return %c0_i32, %c0_i32_0 : i32, i32
  }
  func.func @transform_4(%arg0: i32) -> (i32, i32) {
    %c0_i32 = arith.constant 0 : i32
    %c0_i32_0 = arith.constant 0 : i32
    %c0_i32_1 = arith.constant 0 : i32
    return %c0_i32, %c0_i32_0 : i32, i32
  }
  func.func @transform_5(%arg0: i32) -> (i32, i32) {
    %c0_i32 = arith.constant 0 : i32
    %c0_i32_0 = arith.constant 0 : i32
    %c0_i32_1 = arith.constant 0 : i32
    return %c0_i32, %c0_i32_0 : i32, i32
  }
  func.func @transform_6(%arg0: i32) -> (i32, i32, i32) {
    %c0_i32 = arith.constant 0 : i32
    %c0_i32_0 = arith.constant 0 : i32
    %c0_i32_1 = arith.constant 0 : i32
    return %arg0, %c0_i32, %c0_i32_0 : i32, i32, i32
  }
}

module attributes {stable_mosaic.version = 11 : i64} {
  func.func @spectral_kernel(%arg0: i32, %arg1: memref<8x8x16xbf16, #tpu.memory_space<vmem>>, %arg2: memref<8x16x8xbf16, #tpu.memory_space<vmem>>, %arg3: memref<8x16x8xbf16, #tpu.memory_space<vmem>>, %arg4: memref<8x128xbf16, #tpu.memory_space<vmem>>, %arg5: memref<8x256xbf16, #tpu.memory_space<vmem>>, %arg6: memref<256x8xbf16, #tpu.memory_space<vmem>>, %arg7: memref<8x16x8xf32, #tpu.memory_space<vmem>>) attributes {dimension_semantics = [#tpu.dimension_semantics<parallel>], iteration_bounds = array<i64: 1>, scalar_prefetch = 0 : i64, scratch_operands = 0 : i64, tpu.core_type = #tpu.core_type<tc>, window_params = [{transform_indices = @transform_0, window_bounds = array<i64: 8, 8, 16>}, {transform_indices = @transform_1, window_bounds = array<i64: 8, 16, 8>}, {transform_indices = @transform_2, window_bounds = array<i64: 8, 16, 8>}, {pipeline_mode = #tpu.pipeline_mode<synchronous>, transform_indices = @transform_3, window_bounds = array<i64: 8, 128>}, {pipeline_mode = #tpu.pipeline_mode<synchronous>, transform_indices = @transform_4, window_bounds = array<i64: 8, 256>}, {pipeline_mode = #tpu.pipeline_mode<synchronous>, transform_indices = @transform_5, window_bounds = array<i64: 256, 8>}, {transform_indices = @transform_6, window_bounds = array<i64: 8, 16, 8>}]} {
    %c0 = arith.constant 0 : index
    %c0_0 = arith.constant 0 : index
    %c0_1 = arith.constant 0 : index
    %0 = vector.load %arg1[%c0, %c0_0, %c0_1] : memref<8x8x16xbf16, #tpu.memory_space<vmem>>, vector<8x8x16xbf16>
    %c0_2 = arith.constant 0 : index
    %c0_3 = arith.constant 0 : index
    %c0_4 = arith.constant 0 : index
    %1 = vector.load %arg2[%c0_2, %c0_3, %c0_4] : memref<8x16x8xbf16, #tpu.memory_space<vmem>>, vector<8x16x8xbf16>
    %c0_5 = arith.constant 0 : index
    %c0_6 = arith.constant 0 : index
    %c0_7 = arith.constant 0 : index
    %2 = vector.load %arg3[%c0_5, %c0_6, %c0_7] : memref<8x16x8xbf16, #tpu.memory_space<vmem>>, vector<8x16x8xbf16>
    %c0_8 = arith.constant 0 : index
    %c0_9 = arith.constant 0 : index
    %3 = vector.load %arg4[%c0_8, %c0_9] : memref<8x128xbf16, #tpu.memory_space<vmem>>, vector<8x128xbf16>
    %c0_10 = arith.constant 0 : index
    %c0_11 = arith.constant 0 : index
    %4 = vector.load %arg5[%c0_10, %c0_11] : memref<8x256xbf16, #tpu.memory_space<vmem>>, vector<8x256xbf16>
    %c0_12 = arith.constant 0 : index
    %c0_13 = arith.constant 0 : index
    %5 = vector.load %arg6[%c0_12, %c0_13] : memref<256x8xbf16, #tpu.memory_space<vmem>>, vector<256x8xbf16>
    "tpu.trace_start"() <{level = 10 : i32, message = "tle,tes->tls"}> : () -> ()
    %cst = arith.constant dense<0.000000e+00> : vector<8x8x8xf32>
    %6 = tpu.matmul %0, %1, %cst {dimension_numbers = #tpu.dot_dimension_numbers<[2], [1], [1], [2], [0, 0, 0, 1, 1, 2], [0], [0]>} : vector<8x8x16xbf16>, vector<8x16x8xbf16>, vector<8x8x8xf32> -> vector<8x8x8xf32>
    "tpu.trace_stop"() : () -> ()
    %7 = math.exp %6 : vector<8x8x8xf32>
    %8 = arith.truncf %7 : vector<8x8x8xf32> to vector<8x8x8xbf16>
    %9 = vector.shape_cast %8 : vector<8x8x8xbf16> to vector<64x8xbf16>
    %cst_14 = arith.constant dense<0.000000e+00> : vector<64x128xf32>
    %10 = tpu.matmul %9, %3, %cst_14 {dimension_numbers = #tpu.dot_dimension_numbers<[1], [0], [0], [1], [0, 0, 1, 1], [], []>} : vector<64x8xbf16>, vector<8x128xbf16>, vector<64x128xf32> -> vector<64x128xf32>
    %11 = vector.shape_cast %10 : vector<64x128xf32> to vector<8x8x128xf32>
    %12 = tpu.iota {dimensions = array<i32: 2>} : vector<1x1x128xi32>
    %c5_i32 = arith.constant 5 : i32
    %13 = vector.broadcast %c5_i32 : i32 to vector<1x1x128xi32>
    %14 = arith.cmpi slt, %12, %13 : vector<1x1x128xi32>
    %cst_15 = arith.constant 0.000000e+00 : f32
    %cst_16 = arith.constant -1.000000e+30 : f32
    %15 = vector.broadcast %cst_15 : f32 to vector<1x1x128xf32>
    %16 = vector.broadcast %cst_16 : f32 to vector<1x1x128xf32>
    %17 = arith.select %14, %15, %16 : vector<1x1x128xi1>, vector<1x1x128xf32>
    %18 = vector.broadcast %17 : vector<1x1x128xf32> to vector<8x8x128xf32>
    %19 = arith.addf %11, %18 : vector<8x8x128xf32>
    %cst_17 = arith.constant dense<0xFF800000> : vector<8x8xf32>
    %20 = vector.multi_reduction <maximumf>, %19, %cst_17 [2] : vector<8x8x128xf32> to vector<8x8xf32>
    %21 = vector.shape_cast %20 : vector<8x8xf32> to vector<8x8x1xf32>
    %22 = vector.broadcast %21 : vector<8x8x1xf32> to vector<8x8x128xf32>
    %23 = arith.subf %19, %22 : vector<8x8x128xf32>
    %24 = math.exp %23 : vector<8x8x128xf32>
    %cst_18 = arith.constant dense<0.000000e+00> : vector<8x8xf32>
    %25 = vector.multi_reduction <add>, %24, %cst_18 [2] : vector<8x8x128xf32> to vector<8x8xf32>
    %26 = vector.shape_cast %25 : vector<8x8xf32> to vector<8x8x1xf32>
    %27 = tpu.reciprocal %26 {approx = true} : vector<8x8x1xf32> -> vector<8x8x1xf32>
    %28 = vector.broadcast %27 : vector<8x8x1xf32> to vector<8x8x128xf32>
    %29 = arith.mulf %24, %28 : vector<8x8x128xf32>
    %cst_19 = arith.constant dense<0.000000e+00> : vector<8x128xf32>
    %30 = vector.multi_reduction <add>, %29, %cst_19 [1] : vector<8x8x128xf32> to vector<8x128xf32>
    %31 = vector.shape_cast %30 : vector<8x128xf32> to vector<8x1x128xf32>
    %32 = vector.broadcast %17 : vector<1x1x128xf32> to vector<8x1x128xf32>
    %33 = arith.addf %31, %32 : vector<8x1x128xf32>
    %cst_20 = arith.constant dense<0xFF800000> : vector<8x1xf32>
    %34 = vector.multi_reduction <maximumf>, %33, %cst_20 [2] : vector<8x1x128xf32> to vector<8x1xf32>
    %35 = vector.shape_cast %34 : vector<8x1xf32> to vector<8x1x1xf32>
    %36 = vector.broadcast %35 : vector<8x1x1xf32> to vector<8x1x128xf32>
    %37 = arith.subf %33, %36 : vector<8x1x128xf32>
    %38 = math.exp %37 : vector<8x1x128xf32>
    %cst_21 = arith.constant dense<0.000000e+00> : vector<8x1xf32>
    %39 = vector.multi_reduction <add>, %38, %cst_21 [2] : vector<8x1x128xf32> to vector<8x1xf32>
    %40 = vector.shape_cast %39 : vector<8x1xf32> to vector<8x1x1xf32>
    %41 = tpu.reciprocal %40 {approx = true} : vector<8x1x1xf32> -> vector<8x1x1xf32>
    %42 = vector.broadcast %41 : vector<8x1x1xf32> to vector<8x1x128xf32>
    %43 = arith.mulf %38, %42 : vector<8x1x128xf32>
    %44 = vector.shape_cast %2 : vector<8x16x8xbf16> to vector<128x8xbf16>
    %cst_22 = arith.constant dense<0.000000e+00> : vector<128x256xf32>
    %45 = tpu.matmul %44, %4, %cst_22 {dimension_numbers = #tpu.dot_dimension_numbers<[1], [0], [0], [1], [0, 0, 1, 1], [], []>} : vector<128x8xbf16>, vector<8x256xbf16>, vector<128x256xf32> -> vector<128x256xf32>
    %46 = vector.shape_cast %45 : vector<128x256xf32> to vector<8x16x256xf32>
    %47 = vector.extract_strided_slice %46 {offsets = [0, 0, 0], sizes = [8, 16, 128], strides = [1, 1, 1]} : vector<8x16x256xf32> to vector<8x16x128xf32>
    %48 = vector.broadcast %43 : vector<8x1x128xf32> to vector<8x16x128xf32>
    %49 = arith.mulf %48, %47 : vector<8x16x128xf32>
    %50 = vector.extract_strided_slice %46 {offsets = [0, 0, 128], sizes = [8, 16, 128], strides = [1, 1, 1]} : vector<8x16x256xf32> to vector<8x16x128xf32>
    %51 = tpu.concatenate %49, %50 in 2 : vector<8x16x128xf32>, vector<8x16x128xf32> -> vector<8x16x256xf32>
    %52 = arith.truncf %51 : vector<8x16x256xf32> to vector<8x16x256xbf16>
    %53 = vector.shape_cast %52 : vector<8x16x256xbf16> to vector<128x256xbf16>
    %cst_23 = arith.constant dense<0.000000e+00> : vector<128x8xf32>
    %54 = tpu.matmul %53, %5, %cst_23 {dimension_numbers = #tpu.dot_dimension_numbers<[1], [0], [0], [1], [0, 0, 1, 1], [], []>} : vector<128x256xbf16>, vector<256x8xbf16>, vector<128x8xf32> -> vector<128x8xf32>
    %55 = vector.shape_cast %54 : vector<128x8xf32> to vector<8x16x8xf32>
    %c0_24 = arith.constant 0 : index
    %c0_25 = arith.constant 0 : index
    %c0_26 = arith.constant 0 : index
    %56 = vector.load %arg7[%c0_24, %c0_25, %c0_26] : memref<8x16x8xf32, #tpu.memory_space<vmem>>, vector<8x16x8xf32>
    tpu.vector_store %arg7[%c0_24, %c0_25, %c0_26], %55 {strides = array<i32>} : memref<8x16x8xf32, #tpu.memory_space<vmem>>, vector<8x16x8xf32>,
    return
  }
  func.func @transform_0(%arg0: i32) -> (i32, i32, i32) {
    %c0_i32 = arith.constant 0 : i32
    %c0_i32_0 = arith.constant 0 : i32
    %c0_i32_1 = arith.constant 0 : i32
    return %arg0, %c0_i32, %c0_i32_0 : i32, i32, i32
  }
  func.func @transform_1(%arg0: i32) -> (i32, i32, i32) {
    %c0_i32 = arith.constant 0 : i32
    %c0_i32_0 = arith.constant 0 : i32
    %c0_i32_1 = arith.constant 0 : i32
    return %arg0, %c0_i32, %c0_i32_0 : i32, i32, i32
  }
  func.func @transform_2(%arg0: i32) -> (i32, i32, i32) {
    %c0_i32 = arith.constant 0 : i32
    %c0_i32_0 = arith.constant 0 : i32
    %c0_i32_1 = arith.constant 0 : i32
    return %arg0, %c0_i32, %c0_i32_0 : i32, i32, i32
  }
  func.func @transform_3(%arg0: i32) -> (i32, i32) {
    %c0_i32 = arith.constant 0 : i32
    %c0_i32_0 = arith.constant 0 : i32
    %c0_i32_1 = arith.constant 0 : i32
    return %c0_i32, %c0_i32_0 : i32, i32
  }
  func.func @transform_4(%arg0: i32) -> (i32, i32) {
    %c0_i32 = arith.constant 0 : i32
    %c0_i32_0 = arith.constant 0 : i32
    %c0_i32_1 = arith.constant 0 : i32
    return %c0_i32, %c0_i32_0 : i32, i32
  }
  func.func @transform_5(%arg0: i32) -> (i32, i32) {
    %c0_i32 = arith.constant 0 : i32
    %c0_i32_0 = arith.constant 0 : i32
    %c0_i32_1 = arith.constant 0 : i32
    return %c0_i32, %c0_i32_0 : i32, i32
  }
  func.func @transform_6(%arg0: i32) -> (i32, i32, i32) {
    %c0_i32 = arith.constant 0 : i32
    %c0_i32_0 = arith.constant 0 : i32
    %c0_i32_1 = arith.constant 0 : i32
    return %arg0, %c0_i32, %c0_i32_0 : i32, i32, i32
  }
}

</mosaic_0001>

<bundles_post_ra>
// kernel: tpu_custom_call.1
= control target key start
LH: loop header
LB: loop body
LE: loop exit
PB: predicated region body
PF: predicated region fallthrough
CT: control target
= control target key end

     0   :  { %11 = vsyncpa [#allocation3], 0  ;;  %s2276_s0 = inlined_call_operand.hbm [shape: bf16[8,8,16], index: 0, kind: input, shape index: {}]   ;;  %s2277_s1 = inlined_call_operand.hbm [shape: bf16[8,16,8], index: 1, kind: input, shape index: {}]   ;;  %s2278_s2 = inlined_call_operand.hbm [shape: bf16[8,16,8], index: 2, kind: input, shape index: {}]   ;;  %s2279_s3 = inlined_call_operand.hbm [shape: bf16[8,128], index: 3, kind: input, shape index: {}]   ;;  %s2280_s4 = inlined_call_operand.hbm [shape: bf16[8,256], index: 4, kind: input, shape index: {}]   ;;  %s2281_s5 = inlined_call_operand.hbm [shape: bf16[256,8], index: 5, kind: input, shape index: {}]   ;;  %s2282_s6 = inlined_call_operand.hbm [shape: f32[8,16,8], index: 6, kind: output, shape index: {}]  }
   0x1   :  { %12 = vsyncpa [#allocation6], 0 }
   0x2   :  { %13 = vsyncpa [#allocation9], 0 }
   0x3   :  { %14 = vsyncpa [#allocation12], 0 }
   0x4   :  { %15 = vsyncpa [#allocation4], 0  ;;  %s1873_s21 = smov [#allocation5]   ;;  %s1874_s23 = smov [#allocation8]  }
   0x5   :  { %s33_s22 = sshll.u32 %s1873_s21, 4  ;;  %s58_s24 = sshll.u32 %s1874_s23, 4  ;;  %s34_s22 = int_to_ptr.vmem [resolvable:$true] %s33_s22  ;;  %s59_s24 = int_to_ptr.vmem [resolvable:$true] %s58_s24 }
   0x6   :  { %s1709_s27 = scalar_lea.hbm %s2277_s1, 1024 }
   0x7   :  { %p1710_p0 = scmp.ne.s32.totalorder %s2277_s1, %s1709_s27  ;;  %p1713_p1 = scmp.lt.u32.totalorder %s1709_s27, %s2277_s1 }
   0x9   :  { %p1715_p2 = pnand %p1713_p1, %p1710_p0 }
   0xb   :  { %1718 = shalt.err (!%p1715_p2)
}
   0xc   :  { %s1719_s8 = scalar_lea.vmem %s34_s22, 1024  ;;  %p1724_p4 = scmp.lt.s32.totalorder %s34_s22, %s34_s22 }
   0xd   :  { %p1720_p3 = scmp.ne.s32.totalorder %s34_s22, %s1719_s8  ;;  %p1725_p5 = scmp.lt.s32.totalorder %s1719_s8, %s1719_s8 }
   0xf   :  { %p1726_p6 = por %p1725_p5, %p1724_p4 }
  0x11   :  { %p1727_p7 = pnand %p1726_p6, %p1720_p3 }
  0x13   :  { %1730 = shalt.err (!%p1727_p7)
}
  0x14   :  { %s1875_s9 = smov 64   ;;  %s1876_s10 = smov 4  }
  0x15   :  { %39 = dma.hbm_to_vmem [thread:$0]  %s2277_s1, 1024, %s34_s22, [#allocation6], %s1875_s9, %s1875_s9, %s1876_s10  }
  0x16   :  { %s1731_s15 = scalar_lea.hbm %s2279_s3, 64 }
  0x17   :  { %p1732_p8 = scmp.ne.s32.totalorder %s2279_s3, %s1731_s15  ;;  %p1735_p9 = scmp.lt.u32.totalorder %s1731_s15, %s2279_s3 }
  0x19   :  { %p1737_p10 = pnand %p1735_p9, %p1732_p8 }
  0x1b   :  { %1740 = shalt.err (!%p1737_p10)
}
  0x1c   :  { %s1741_s20 = scalar_lea.vmem %s59_s24, 64  ;;  %p1746_p12 = scmp.lt.s32.totalorder %s59_s24, %s59_s24 }
  0x1d   :  { %p1742_p11 = scmp.ne.s32.totalorder %s59_s24, %s1741_s20  ;;  %p1747_p13 = scmp.lt.s32.totalorder %s1741_s20, %s1741_s20 }
  0x1f   :  { %p1748_p0 = por %p1747_p13, %p1746_p12 }
  0x21   :  { %p1749_p1 = pnand %p1748_p0, %p1742_p11 }
  0x23   :  { %1752 = shalt.err (!%p1749_p1)
}
  0x24   :  { %61 = dma.hbm_to_vmem [thread:$0]  %s2279_s3, 64, %s59_s24, [#allocation9]  }
  0x25   :  { %s1877_s22 = smov [#allocation2]   ;;  %s1878_s25 = smov [#allocation7]  }
  0x26   :  { %s21_s23 = sshll.u32 %s1877_s22, 4  ;;  %s45_s26 = sshll.u32 %s1878_s25, 4  ;;  %s22_s23 = int_to_ptr.vmem [resolvable:$true] %s21_s23  ;;  %s1950_s26 = int_to_ptr.vmem [resolvable:$true] %s45_s26 }
  0x27   :  { %s1753_s29 = scalar_lea.hbm %s2276_s0, 512 }
  0x28   :  { %p1754_p2 = scmp.ne.s32.totalorder %s2276_s0, %s1753_s29  ;;  %p1757_p3 = scmp.lt.u32.totalorder %s1753_s29, %s2276_s0 }
  0x2a   :  { %p1759_p4 = pnand %p1757_p3, %p1754_p2 }
  0x2c   :  { %1762 = shalt.err (!%p1759_p4)
}
  0x2d   :  { %s1763_s3 = scalar_lea.vmem %s22_s23, 512  ;;  %p1768_p6 = scmp.lt.s32.totalorder %s22_s23, %s22_s23 }
  0x2e   :  { %p1764_p5 = scmp.ne.s32.totalorder %s22_s23, %s1763_s3  ;;  %p1769_p7 = scmp.lt.s32.totalorder %s1763_s3, %s1763_s3 }
  0x30   :  { %p1770_p8 = por %p1769_p7, %p1768_p6 }
  0x32   :  { %p1771_p9 = pnand %p1770_p8, %p1764_p5 }
  0x34   :  { %1774 = shalt.err (!%p1771_p9)
}
  0x35   :  { %27 = dma.hbm_to_vmem [thread:$0]  %s2276_s0, 512, %s22_s23, [#allocation3], %s1875_s9, %s1875_s9, %s1876_s10  }
  0x36   :  { %s1775_s15 = scalar_lea.hbm %s2278_s2, 1024 }
  0x37   :  { %p1776_p10 = scmp.ne.s32.totalorder %s2278_s2, %s1775_s15  ;;  %p1779_p11 = scmp.lt.u32.totalorder %s1775_s15, %s2278_s2 }
  0x39   :  { %p1781_p12 = pnand %p1779_p11, %p1776_p10 }
  0x3b   :  { %1784 = shalt.err (!%p1781_p12)
}
  0x3c   :  { %s1785_s20 = scalar_lea.vmem %s1950_s26, 1024  ;;  %p1790_p0 = scmp.lt.s32.totalorder %s1950_s26, %s1950_s26 }
  0x3d   :  { %p1786_p13 = scmp.ne.s32.totalorder %s1950_s26, %s1785_s20  ;;  %p1791_p1 = scmp.lt.s32.totalorder %s1785_s20, %s1785_s20 }
  0x3f   :  { %p1792_p2 = por %p1791_p1, %p1790_p0 }
  0x41   :  { %p1793_p3 = pnand %p1792_p2, %p1786_p13 }
  0x43   :  { %1796 = shalt.err (!%p1793_p3)
}
  0x44   :  { %51 = dma.hbm_to_vmem [thread:$0]  %s2278_s2, 1024, %s1950_s26, [#allocation6], %s1875_s9, %s1875_s9, %s1876_s10  }
  0x45   :  { %s1879_s21 = smov [#allocation10]   ;;  %s1880_s23 = smov [#allocation11]  }
  0x46   :  { %s68_s22 = sshll.u32 %s1879_s21, 4  ;;  %s77_s25 = sshll.u32 %s1880_s23, 4  ;;  %s69_s22 = int_to_ptr.vmem [resolvable:$true] %s68_s22  ;;  %s1987_s25 = int_to_ptr.vmem [resolvable:$true] %s77_s25 }
  0x47   :  { %s1797_s29 = scalar_lea.hbm %s2280_s4, 128 }
  0x48   :  { %p1798_p4 = scmp.ne.s32.totalorder %s2280_s4, %s1797_s29  ;;  %p1801_p5 = scmp.lt.u32.totalorder %s1797_s29, %s2280_s4 }
  0x4a   :  { %p1803_p6 = pnand %p1801_p5, %p1798_p4 }
  0x4c   :  { %1806 = shalt.err (!%p1803_p6)
}
  0x4d   :  { %s1807_s2 = scalar_lea.vmem %s69_s22, 128  ;;  %p1812_p8 = scmp.lt.s32.totalorder %s69_s22, %s69_s22 }
  0x4e   :  { %p1808_p7 = scmp.ne.s32.totalorder %s69_s22, %s1807_s2  ;;  %p1813_p9 = scmp.lt.s32.totalorder %s1807_s2, %s1807_s2 }
  0x50   :  { %p1814_p10 = por %p1813_p9, %p1812_p8 }
  0x52   :  { %p1815_p11 = pnand %p1814_p10, %p1808_p7 }
  0x54   :  { %1818 = shalt.err (!%p1815_p11)
}
  0x55   :  { %71 = dma.hbm_to_vmem [thread:$0]  %s2280_s4, 128, %s69_s22, [#allocation9]  }
  0x56   :  { %s1819_s13 = scalar_lea.hbm %s2281_s5, 2048 }
  0x57   :  { %p1820_p12 = scmp.ne.s32.totalorder %s2281_s5, %s1819_s13  ;;  %p1823_p13 = scmp.lt.u32.totalorder %s1819_s13, %s2281_s5 }
  0x59   :  { %p1825_p0 = pnand %p1823_p13, %p1820_p12 }
  0x5b   :  { %1828 = shalt.err (!%p1825_p0)
}
  0x5c   :  { %s1829_s18 = scalar_lea.vmem %s1987_s25, 2048  ;;  %p1834_p2 = scmp.lt.s32.totalorder %s1987_s25, %s1987_s25 }
  0x5d   :  { %p1830_p1 = scmp.ne.s32.totalorder %s1987_s25, %s1829_s18  ;;  %p1835_p3 = scmp.lt.s32.totalorder %s1829_s18, %s1829_s18 }
  0x5f   :  { %p1836_p4 = por %p1835_p3, %p1834_p2 }
  0x61   :  { %p1837_p5 = pnand %p1836_p4, %p1830_p1 }
  0x63   :  { %1840 = shalt.err (!%p1837_p5)
}
  0x64   :  { %83 = dma.hbm_to_vmem [thread:$0]  %s2281_s5, 2048, %s1987_s25, [#allocation12], %s1875_s9, %s1875_s9, %s1876_s10  }
  0x65   :  { %1863 = dma.done.wait [#allocation3], 512  }
  0x66   :  { %1864 = vsyncadd [#allocation3], 4294966784 }
  0x67   :  { %1865 = dma.done.wait [#allocation6], 2048  }
  0x68   :  { %1866 = vsyncadd [#allocation6], 4294965248 }
  0x69   :  { %1867 = dma.done.wait [#allocation9], 192  }
  0x6a   :  { %1868 = vsyncadd [#allocation9], 4294967104 }
  0x6b   :  { %1869 = dma.done.wait [#allocation12], 2048  }
  0x6c   :  { %1870 = vsyncadd [#allocation12], 4294965248  ;;  %v1881_v0 = vmov 0.0   ;;  %vm1882_vm0 = vmmov 0   ;;  %v1595_v1 = vld [vmem:[#allocation5] sm:$0xff]   ;;  %v1596_v2 = vld [vmem:[#allocation5 + $0x8] sm:$0xff]  }
  0x6d   :  { %1505 = vmatprep.subr.bf16.mxu0 %v1881_v0  ;;  %1511 = vmatprep.subr.bf16.mxu1 %v1881_v0  ;;  %vm183_vm1 = vcmask 130048   ;;  %v103_v3 = vld [vmem:[#allocation2] sm:$0xf]  ;;  %v104_v4 = vld [vmem:[#allocation2 + $0x4] sm:$0xf]  ;;  %v1597_v5 = vld [vmem:[#allocation5 + $0x10] sm:$0xff]  }
  0x6e   :  { %1507 = vmatprep.mubr.msk.bf16.mxu0 %vm1882_vm0, %v1881_v0  ;;  %1513 = vmatprep.mubr.msk.bf16.mxu1 %vm1882_vm0, %v1881_v0  ;;  %v1598_v6 = vld [vmem:[#allocation5 + $0x18] sm:$0xff]   ;;  %v105_v7 = vld [vmem:[#allocation2 + $0x8] sm:$0xf]  ;;  %v106_v8 = vld [vmem:[#allocation2 + $0xc] sm:$0xf]  ;;  %vm627_vm2 = vcmask 1043456  }
  0x6f   :  { %1506 = vmatpush3.bf16.msra.mxu0 %v1595_v1  ;;  %1512 = vmatpush3.bf16.msra.mxu1 %v1596_v2  ;;  %v1599_v9 = vld [vmem:[#allocation5 + $0x20] sm:$0xff]   ;;  %v1600_v10 = vld [vmem:[#allocation5 + $0x28] sm:$0xff]   ;;  %v107_v11 = vld [vmem:[#allocation2 + $0x10] sm:$0xf]  ;;  %vm614_vm3 = vcmask 64512   ;;  %s1885_s5 = smov [#allocation13]  }
  0x70   :  { %1517 = vmatprep.subr.bf16.mxu0 %v1881_v0  ;;  %1523 = vmatprep.subr.bf16.mxu1 %v1881_v0  ;;  %v1601_v12 = vld [vmem:[#allocation5 + $0x30] sm:$0xff]   ;;  %v1602_v14 = vld [vmem:[#allocation5 + $0x38] sm:$0xff]   ;;  %v143_v17 = vld [vmem:[#allocation8] sm:$0xf]  ;;  %s1342_s9 = sshll.u32 %s1885_s5, 4  ;;  %s1343_s9 = int_to_ptr.vmem [resolvable:$true] %s1342_s9 }
  0x71   :  { %v108_v13 = vld [vmem:[#allocation2 + $0x14] sm:$0xf]  ;;  %v109_v15 = vld [vmem:[#allocation2 + $0x18] sm:$0xf]  ;;  %v110_v16 = vld [vmem:[#allocation2 + $0x1c] sm:$0xf]  ;;  %p1846_p7 = scmp.lt.s32.totalorder %s1343_s9, %s1343_s9 }
  0x72   :  { %1508 = vmatmul.mubr.msk.bf16.vlgmr.msra.gmra.mrb[0].mxu0 %vm183_vm1, %v103_v3  ;;  %1514 = vmatmul.mubr.msk.bf16.vlgmr.msra.gmra.mrb[0].mxu1 %vm183_vm1, %v104_v4  ;;  %v629_v18 = vsel %vm627_vm2, %v143_v17, 0  ;;  %s1841_s10 = scalar_lea.vmem %s1343_s9, 2048 }
  0x73   :  { %1518 = vmatpush3.bf16.msra.mxu0 %v1597_v5  ;;  %1524 = vmatpush3.bf16.msra.mxu1 %v1598_v6  ;;  %p1842_p6 = scmp.ne.s32.totalorder %s1343_s9, %s1841_s10  ;;  %p1847_p8 = scmp.lt.s32.totalorder %s1841_s10, %s1841_s10 }
  0x74   :  { %1519 = vmatprep.mubr.msk.bf16.mxu0 %vm1882_vm0, %v1881_v0  ;;  %1525 = vmatprep.mubr.msk.bf16.mxu1 %vm1882_vm0, %v1881_v0 }
  0x75   :  { %1529 = vmatprep.subr.bf16.mxu0 %v1881_v0  ;;  %1535 = vmatprep.subr.bf16.mxu1 %v1881_v0  ;;  %p1848_p9 = por %p1847_p8, %p1846_p7 }
  0x77   :  { %p1849_p10 = pnand %p1848_p9, %p1842_p6 }
  0x7a   :  { %1520 = vmatmul.mubr.msk.bf16.vlgmr.msra.gmra.mrb[4].mxu0 %vm183_vm1, %v105_v7  ;;  %1526 = vmatmul.mubr.msk.bf16.vlgmr.msra.gmra.mrb[4].mxu1 %vm183_vm1, %v106_v8  ;;  %v696_v7 = vlaneseq }
  0x7b   :  { %1530 = vmatpush3.bf16.msra.mxu0 %v1599_v9  ;;  %1536 = vmatpush3.bf16.msra.mxu1 %v1600_v10  ;;  %v1883_v9 = vmov -1e+30  }
  0x7c   :  { %1531 = vmatprep.mubr.msk.bf16.mxu0 %vm1882_vm0, %v1881_v0  ;;  %1537 = vmatprep.mubr.msk.bf16.mxu1 %vm1882_vm0, %v1881_v0  ;;  %v697_v8 = vand.u32 127, %v696_v7  ;;  %v1612_v7 = vld [vmem:[#allocation7 + $0x38] sm:$0xff]  }
  0x7d   :  { %1541 = vmatprep.subr.bf16.mxu0 %v1881_v0  ;;  %1547 = vmatprep.subr.bf16.mxu1 %v1881_v0 }
  0x7e   :  { %vm698_vm4 = vcmp.lt.s32.totalorder %v697_v8, 5 }
  0x7f   :  { %v2043_v10 = vsel %vm698_vm4, 0.0, %v1883_v9 }
  0x82   :  { %1532 = vmatmul.mubr.msk.bf16.vlgmr.msra.gmra.mrb[8].mxu0 %vm183_vm1, %v107_v11  ;;  %1538 = vmatmul.mubr.msk.bf16.vlgmr.msra.gmra.mrb[8].mxu1 %vm183_vm1, %v108_v13 }
  0x83   :  { %1542 = vmatpush3.bf16.msra.mxu0 %v1601_v12  ;;  %1548 = vmatpush3.bf16.msra.mxu1 %v1602_v14 }
  0x84   :  { %1543 = vmatprep.mubr.msk.bf16.mxu0 %vm1882_vm0, %v1881_v0  ;;  %1549 = vmatprep.mubr.msk.bf16.mxu1 %vm1882_vm0, %v1881_v0 }
  0x85   :  { %1579 = vmatprep.subr.msk.bf16.mxu0 %vm627_vm2, %v143_v17 }
  0x8a   :  { %1544 = vmatmul.mubr.msk.bf16.vlgmr.msra.gmra.mrb[12].mxu0 %vm183_vm1, %v109_v15  ;;  %1550 = vmatmul.mubr.msk.bf16.vlgmr.msra.gmra.mrb[12].mxu1 %vm183_vm1, %v110_v16 }
  0x8b   :  { %1554 = vmatpush3.bf16.msra.mxu0 %v629_v18 }
 0x145   :  { %v221_v19 = vpop.f32.mrb[0].mxu0  ;;  %v270_v21 = vpop.f32.mrb[0].mxu1 }
 0x146   :  { %v570_v20 = vmul.f32 1.442695, %v221_v19  ;;  %v1509_v22 = vpop.f32.mrb[1].mxu0  ;;  %v572_v23 = vmul.f32 1.442695, %v270_v21  ;;  %v1515_v24 = vpop.f32.mrb[1].mxu1 }
 0x147   :  { %v224_v25 = vpop.f32.mrb[2].mxu0  ;;  %v273_v26 = vpop.f32.mrb[2].mxu1 }
 0x148   :  { %1629 = vpow2.f32 %v570_v20  ;;  %v1510_v27 = vpop.f32.mrb[3].mxu0  ;;  %v1516_v28 = vpop.f32.mrb[3].mxu1 }
 0x149   :  { %1631 = vpow2.f32 %v572_v23 }
 0x14d   :  { %v319_v29 = vpop.f32.mrb[4].mxu0  ;;  %v368_v31 = vpop.f32.mrb[4].mxu1 }
 0x14e   :  { %v574_v30 = vmul.f32 1.442695, %v319_v29  ;;  %v1521_v32 = vpop.f32.mrb[5].mxu0  ;;  %v576_v33 = vmul.f32 1.442695, %v368_v31  ;;  %v1527_v34 = vpop.f32.mrb[5].mxu1 }
 0x14f   :  { %v322_v35 = vpop.f32.mrb[6].mxu0  ;;  %v371_v36 = vpop.f32.mrb[6].mxu1 }
 0x150   :  { %1633 = vpow2.f32 %v574_v30  ;;  %v1522_v37 = vpop.f32.mrb[7].mxu0  ;;  %v1528_v38 = vpop.f32.mrb[7].mxu1 }
 0x151   :  { %1635 = vpow2.f32 %v576_v33 }
 0x152   :  { %v1630_v39 = vpop.eup %1629 }
 0x153   :  { %v1632_v40 = vpop.eup %1631 }
 0x154   :  { %v1416_v41 = vpack.c.bf16 %v1632_v40, %v1630_v39 }
 0x155   :  { %v417_v42 = vpop.f32.mrb[8].mxu0  ;;  %v466_v44 = vpop.f32.mrb[8].mxu1 }
 0x156   :  { %1555 = vmatprep.mubr.msk.bf16.mxu0 %vm614_vm3, %v1416_v41  ;;  %v578_v43 = vmul.f32 1.442695, %v417_v42  ;;  %v1533_v45 = vpop.f32.mrb[9].mxu0  ;;  %v580_v46 = vmul.f32 1.442695, %v466_v44  ;;  %v1539_v47 = vpop.f32.mrb[9].mxu1 }
 0x157   :  { %v420_v48 = vpop.f32.mrb[10].mxu0  ;;  %v469_v49 = vpop.f32.mrb[10].mxu1 }
 0x158   :  { %1637 = vpow2.f32 %v578_v43  ;;  %v1534_v50 = vpop.f32.mrb[11].mxu0  ;;  %v1540_v51 = vpop.f32.mrb[11].mxu1 }
 0x159   :  { %1639 = vpow2.f32 %v580_v46 }
 0x15a   :  { %v1634_v52 = vpop.eup %1633 }
 0x15b   :  { %v1636_v53 = vpop.eup %1635 }
 0x15c   :  { %v1417_v54 = vpack.c.bf16 %v1636_v53, %v1634_v52 }
 0x15d   :  { %v515_v55 = vpop.f32.mrb[12].mxu0  ;;  %v564_v57 = vpop.f32.mrb[12].mxu1 }
 0x15e   :  { %v582_v56 = vmul.f32 1.442695, %v515_v55  ;;  %1556 = vmatmul.mubr.msk.bf16.vlgmr.msra.gmra.mrb[16].mxu0 %vm614_vm3, %v1417_v54  ;;  %v1545_v58 = vpop.f32.mrb[13].mxu0  ;;  %v584_v59 = vmul.f32 1.442695, %v564_v57  ;;  %v1551_v60 = vpop.f32.mrb[13].mxu1 }
 0x15f   :  { %v518_v61 = vpop.f32.mrb[14].mxu0  ;;  %v567_v62 = vpop.f32.mrb[14].mxu1 }
 0x160   :  { %1641 = vpow2.f32 %v582_v56  ;;  %v1546_v63 = vpop.f32.mrb[15].mxu0  ;;  %v1552_v0 = vpop.f32.mrb[15].mxu1  ;;  %v1884_v62 = vmov 0  }
 0x161   :  { %1643 = vpow2.f32 %v584_v59  ;;  %v144_v59 = vld [vmem:[#allocation10] sm:$0xff]  ;;  %1015 = vmatprep.mubr.bf16.mxu1 %v1884_v62 }
 0x162   :  { %v1638_v1 = vpop.eup %1637  ;;  %v1390_v60 = vcombine.high %v144_v59, %v144_v59  ;;  %v1389_v61 = vcombine.low %v144_v59, %v144_v59  ;;  %v1605_v0 = vld [vmem:[#allocation7] sm:$0xff]  }
 0x163   :  { %v1640_v2 = vpop.eup %1639 }
 0x164   :  { %v1418_v3 = vpack.c.bf16 %v1640_v2, %v1638_v1  ;;  %1391 = vmatprep.subr.msk.bf16.mxu1 %vm627_vm2, %v1390_v60  ;;  %v978_v63 = vsel %vm627_vm2, %v1389_v61, 0  ;;  %v1606_v1 = vld [vmem:[#allocation7 + $0x8] sm:$0xff]   ;;  %v1607_v2 = vld [vmem:[#allocation7 + $0x10] sm:$0xff]  }
 0x165   :  { %984 = vmatpush1.bf16.msra.mxu1 %v978_v63 }
 0x166   :  { %1559 = vmatprep.mubr.msk.bf16.mxu0 %vm614_vm3, %v1418_v3  ;;  %v1608_v3 = vld [vmem:[#allocation7 + $0x18] sm:$0xff]  }
 0x168   :  { %1392 = vmatmul.mubr.msk.bf16.vlgmr.msra.gmra.mrb[16].mxu1 %vm614_vm3, %v1605_v0 }
 0x169   :  { %1025 = vmatprep.mubr.bf16.mxu1 %v1884_v62 }
 0x16a   :  { %v1642_v4 = vpop.eup %1641 }
 0x16b   :  { %v1644_v5 = vpop.eup %1643 }
 0x16c   :  { %v1419_v6 = vpack.c.bf16 %v1644_v5, %v1642_v4  ;;  %v1609_v4 = vld [vmem:[#allocation7 + $0x20] sm:$0xff]   ;;  %v1610_v5 = vld [vmem:[#allocation7 + $0x28] sm:$0xff]  }
 0x16e   :  { %1560 = vmatmul.mubr.msk.bf16.gmra.mrb[20].mxu0 %vm614_vm3, %v1419_v6  ;;  %v1611_v6 = vld [vmem:[#allocation7 + $0x30] sm:$0xff]  }
 0x170   :  { %1393 = vmatmul.mubr.msk.bf16.gmra.mrb[20].mxu1 %vm614_vm3, %v1606_v1 }
 0x171   :  { %1035 = vmatprep.mubr.bf16.mxu1 %v1884_v62 }
 0x178   :  { %1394 = vmatmul.mubr.msk.bf16.gmra.mrb[24].mxu1 %vm614_vm3, %v1607_v2 }
 0x179   :  { %1045 = vmatprep.mubr.bf16.mxu1 %v1884_v62 }
 0x180   :  { %1395 = vmatmul.mubr.msk.bf16.gmra.mrb[28].mxu1 %vm614_vm3, %v1608_v3 }
 0x181   :  { %1055 = vmatprep.mubr.bf16.mxu1 %v1884_v62 }
 0x188   :  { %1396 = vmatmul.mubr.msk.bf16.gmra.mrb[32].mxu1 %vm614_vm3, %v1609_v4 }
 0x189   :  { %1065 = vmatprep.mubr.bf16.mxu1 %v1884_v62 }
 0x190   :  { %1397 = vmatmul.mubr.msk.bf16.gmra.mrb[36].mxu1 %vm614_vm3, %v1610_v5 }
 0x191   :  { %1075 = vmatprep.mubr.bf16.mxu1 %v1884_v62 }
 0x198   :  { %1398 = vmatmul.mubr.msk.bf16.gmra.mrb[40].mxu1 %vm614_vm3, %v1611_v6 }
 0x199   :  { %1085 = vmatprep.mubr.bf16.mxu1 %v1884_v62 }
 0x1a0   :  { %1399 = vmatmul.mubr.msk.bf16.gmra.mrb[44].mxu1 %vm614_vm3, %v1612_v7 }
 0x231   :  { %v1557_v11 = vpop.f32.mrb[16].mxu0 }
 0x232   :  { %v702_v12 = vadd.f32 %v1557_v11, %v2043_v10  ;;  %v665_v13 = vpop.f32.mrb[17].mxu0 }
 0x233   :  { %v700_v14 = vadd.f32 %v2043_v10, %v665_v13  ;;  %v1558_v15 = vpop.f32.mrb[18].mxu0 }
 0x234   :  { %712 = vmax.xlane.f32.xlu1 %v702_v12  ;;  %v668_v16 = vpop.f32.mrb[19].mxu0  ;;  %v703_v17 = vadd.f32 %v1558_v15, %v2043_v10 }
 0x235   :  { %708 = vmax.xlane.f32.xlu0 %v700_v14  ;;  %v701_v18 = vadd.f32 %v2043_v10, %v668_v16 }
 0x238   :  { %714 = vmax.xlane.f32.xlu1 %v703_v17 }
 0x239   :  { %710 = vmax.xlane.f32.xlu0 %v701_v18 }
 0x241   :  { %v1561_v19 = vpop.f32.mrb[20].mxu0 }
 0x242   :  { %v706_v20 = vadd.f32 %v1561_v19, %v2043_v10  ;;  %v681_v21 = vpop.f32.mrb[21].mxu0 }
 0x243   :  { %v704_v22 = vadd.f32 %v2043_v10, %v681_v21  ;;  %v1562_v23 = vpop.f32.mrb[22].mxu0 }
 0x244   :  { %720 = vmax.xlane.f32.xlu1 %v706_v20  ;;  %v707_v24 = vadd.f32 %v1562_v23, %v2043_v10  ;;  %v684_v25 = vpop.f32.mrb[23].mxu0 }
 0x245   :  { %716 = vmax.xlane.f32.xlu0 %v704_v22  ;;  %v705_v26 = vadd.f32 %v2043_v10, %v684_v25 }
 0x248   :  { %722 = vmax.xlane.f32.xlu1 %v707_v24 }
 0x249   :  { %718 = vmax.xlane.f32.xlu0 %v705_v26 }
 0x2c1   :  { %v713_v27 = vpop.xlane.xlu1 %712 }
 0x2c2   :  { %v726_v28 = vsub.f32 %v702_v12, %v713_v27  ;;  %v709_v29 = vpop.xlane.xlu0 %708 }
 0x2c3   :  { %v724_v30 = vsub.f32 %v700_v14, %v709_v29 }
 0x2c4   :  { %v736_v33 = vmul.f32 1.442695, %v726_v28 }
 0x2c5   :  { %v732_v31 = vmul.f32 1.442695, %v724_v30  ;;  %v715_v32 = vpop.xlane.xlu1 %714 }
 0x2c6   :  { %v711_v34 = vpop.xlane.xlu0 %710  ;;  %v727_v35 = vsub.f32 %v703_v17, %v715_v32 }
 0x2c7   :  { %1645 = vpow2.f32 %v732_v31  ;;  %v725_v36 = vsub.f32 %v701_v18, %v711_v34 }
 0x2c8   :  { %1647 = vpow2.f32 %v736_v33  ;;  %v738_v38 = vmul.f32 1.442695, %v727_v35 }
 0x2c9   :  { %v734_v37 = vmul.f32 1.442695, %v725_v36 }
 0x2cb   :  { %1649 = vpow2.f32 %v734_v37 }
 0x2cc   :  { %1651 = vpow2.f32 %v738_v38 }
 0x2d1   :  { %v2053_v39 = vpop.eup %1645  ;;  %v721_v40 = vpop.xlane.xlu1 %720 }
 0x2d2   :  { %v730_v41 = vsub.f32 %v706_v20, %v721_v40  ;;  %v717_v42 = vpop.xlane.xlu0 %716  ;;  %748 = vadd.xlane.f32.xlu0 %v2053_v39  ;;  %v2056_v44 = vpop.eup %1647 }
 0x2d3   :  { %v728_v43 = vsub.f32 %v704_v22, %v717_v42 }
 0x2d4   :  { %v744_v45 = vmul.f32 1.442695, %v730_v41 }
 0x2d5   :  { %v2058_v46 = vpop.eup %1649  ;;  %v740_v47 = vmul.f32 1.442695, %v728_v43  ;;  %v723_v48 = vpop.xlane.xlu1 %722 }
 0x2d6   :  { %1653 = vpow2.f32 %v744_v45  ;;  %v731_v49 = vsub.f32 %v707_v24, %v723_v48  ;;  %750 = vadd.xlane.f32.xlu1 %v2058_v46  ;;  %752 = vadd.xlane.f32.xlu0 %v2056_v44  ;;  %v719_v50 = vpop.xlane.xlu0 %718  ;;  %v2062_v53 = vpop.eup %1651 }
 0x2d7   :  { %1655 = vpow2.f32 %v740_v47  ;;  %v729_v51 = vsub.f32 %v705_v26, %v719_v50 }
 0x2d8   :  { %v746_v52 = vmul.f32 1.442695, %v731_v49 }
 0x2d9   :  { %v742_v54 = vmul.f32 1.442695, %v729_v51 }
 0x2da   :  { %1657 = vpow2.f32 %v746_v52  ;;  %754 = vadd.xlane.f32.xlu1 %v2062_v53 }
 0x2db   :  { %1659 = vpow2.f32 %v742_v54 }
 0x2e0   :  { %v2065_v55 = vpop.eup %1653 }
 0x2e1   :  { %v2067_v56 = vpop.eup %1655  ;;  %760 = vadd.xlane.f32.xlu1 %v2065_v55 }
 0x2e2   :  { %756 = vadd.xlane.f32.xlu0 %v2067_v56 }
 0x2e4   :  { %v2071_v57 = vpop.eup %1657 }
 0x2e5   :  { %v2073_v58 = vpop.eup %1659  ;;  %762 = vadd.xlane.f32.xlu1 %v2071_v57 }
 0x2e6   :  { %758 = vadd.xlane.f32.xlu0 %v2073_v58 }
 0x35f   :  { %v749_v8 = vpop.xlane.xlu0 %748 }
 0x360   :  { %1661 = vrcp.f32 %v749_v8 }
 0x363   :  { %v751_v9 = vpop.xlane.xlu1 %750  ;;  %v753_v11 = vpop.xlane.xlu0 %752 }
 0x364   :  { %1663 = vrcp.f32 %v751_v9 }
 0x365   :  { %1665 = vrcp.f32 %v753_v11 }
 0x367   :  { %v755_v12 = vpop.xlane.xlu1 %754 }
 0x368   :  { %1667 = vrcp.f32 %v755_v12 }
 0x36a   :  { %v1662_v13 = vpop.eup %1661 }
 0x36b   :  { %v772_v14 = vmul.f32 %v1662_v13, %v2053_v39 }
 0x36d   :  { %v780_v15 = vrot.slane %v772_v14, 4 }
 0x36e   :  { %v1664_v16 = vpop.eup %1663  ;;  %v761_v17 = vpop.xlane.xlu1 %760 }
 0x36f   :  { %v1666_v18 = vpop.eup %1665  ;;  %1669 = vrcp.f32 %v761_v17  ;;  %v757_v19 = vpop.xlane.xlu0 %756  ;;  %v781_v20 = vadd.f32 %v780_v15, %v772_v14  ;;  %v773_v21 = vmul.f32 %v1664_v16, %v2058_v46 }
 0x370   :  { %1671 = vrcp.f32 %v757_v19  ;;  %v774_v22 = vmul.f32 %v1666_v18, %v2056_v44 }
 0x371   :  { %v782_v23 = vrot.slane %v781_v20, 2  ;;  %v786_v24 = vrot.slane %v773_v21, 4 }
 0x372   :  { %v1668_v25 = vpop.eup %1667  ;;  %v763_v26 = vpop.xlane.xlu1 %762  ;;  %v792_v27 = vrot.slane %v774_v22, 4 }
 0x373   :  { %1673 = vrcp.f32 %v763_v26  ;;  %v759_v28 = vpop.xlane.xlu0 %758  ;;  %v783_v29 = vadd.f32 %v782_v23, %v781_v20  ;;  %v787_v30 = vadd.f32 %v786_v24, %v773_v21  ;;  %v775_v31 = vmul.f32 %v1668_v25, %v2062_v53  ;;  %v1613_v26 = vld [vmem:[#allocation11 + $0x40] sm:$0xff]  }
 0x374   :  { %1675 = vrcp.f32 %v759_v28  ;;  %v793_v32 = vadd.f32 %v792_v27, %v774_v22  ;;  %v1614_v27 = vld [vmem:[#allocation11] sm:$0xff]   ;;  %v1615_v28 = vld [vmem:[#allocation11 + $0x48] sm:$0xff]   ;;  %1441 = vmatprep.subr.bf16.mxu0 %v1613_v26  ;;  %1563 = vmatprep.subr.bf16.mxu1 %v1613_v26 }
 0x375   :  { %v784_v33 = vrot.slane %v783_v29, 1  ;;  %v788_v34 = vrot.slane %v787_v30, 2  ;;  %v798_v35 = vrot.slane %v775_v31, 4  ;;  %1442 = vmatpush3.bf16.msra.mxu0 %v1614_v27  ;;  %1571 = vmatpush3.bf16.msra.mxu1 %v1614_v27 }
 0x376   :  { %v794_v36 = vrot.slane %v793_v32, 2  ;;  %1443 = vmatprep.subr.bf16.mxu0 %v1615_v28  ;;  %1564 = vmatprep.subr.bf16.mxu1 %v1615_v28 }
 0x377   :  { %v785_v37 = vadd.f32 %v784_v33, %v783_v29  ;;  %v789_v38 = vadd.f32 %v788_v34, %v787_v30  ;;  %v799_v39 = vadd.f32 %v798_v35, %v775_v31  ;;  %v1616_v29 = vld [vmem:[#allocation11 + $0x8] sm:$0xff]   ;;  %v1617_v30 = vld [vmem:[#allocation11 + $0x50] sm:$0xff]   ;;  %v2127_v33 = vpop.f32.mrb[16].mxu1 }
 0x378   :  { %v795_v40 = vadd.f32 %v794_v36, %v793_v32  ;;  %v1618_v31 = vld [vmem:[#allocation11 + $0x10] sm:$0xff]   ;;  %v1620_v32 = vld [vmem:[#allocation11 + $0x18] sm:$0xff]   ;;  %v1019_v34 = vpop.f32.mrb[17].mxu1 }
 0x379   :  { %v1670_v41 = vpop.eup %1669  ;;  %v2092_v42 = vadd.f32 %v785_v37, %v2043_v10  ;;  %v790_v43 = vrot.slane %v789_v38, 1  ;;  %v800_v44 = vrot.slane %v799_v39, 2  ;;  %1444 = vmatpush3.bf16.msra.mxu0 %v1616_v29  ;;  %1572 = vmatpush3.bf16.msra.mxu1 %v1616_v29  ;;  %v2129_v35 = vpop.f32.mrb[18].mxu1 }
 0x37a   :  { %v1672_v45 = vpop.eup %1671  ;;  %v796_v46 = vrot.slane %v795_v40, 1  ;;  %v778_v47 = vmul.f32 %v1670_v41, %v2065_v55  ;;  %1445 = vmatprep.subr.bf16.mxu0 %v1617_v30  ;;  %1565 = vmatprep.subr.bf16.mxu1 %v1617_v30  ;;  %v1023_v36 = vpop.f32.mrb[19].mxu1 }
 0x37b   :  { %836 = vmax.xlane.f32.xlu0 %v2092_v42  ;;  %v791_v48 = vadd.f32 %v790_v43, %v789_v38  ;;  %v801_v49 = vadd.f32 %v800_v44, %v799_v39  ;;  %v776_v50 = vmul.f32 %v1672_v45, %v2067_v56  ;;  %v1113_v37 = vpack.c.bf16 %v1023_v36, %v1019_v34 }
 0x37c   :  { %v797_v51 = vadd.f32 %v796_v46, %v795_v40  ;;  %v816_v52 = vrot.slane %v778_v47, 4 }
 0x37d   :  { %v1674_v53 = vpop.eup %1673  ;;  %v2098_v54 = vadd.f32 %v791_v48, %v2043_v10  ;;  %v802_v59 = vrot.slane %v801_v49, 1  ;;  %v804_v60 = vrot.slane %v776_v50, 4  ;;  %1446 = vmatpush3.bf16.msra.mxu0 %v1618_v31  ;;  %1573 = vmatpush3.bf16.msra.mxu1 %v1618_v31 }
 0x37e   :  { %v1676_v61 = vpop.eup %1675  ;;  %v2101_v62 = vadd.f32 %v797_v51, %v2043_v10  ;;  %v817_v63 = vadd.f32 %v816_v52, %v778_v47  ;;  %v779_v55 = vmul.f32 %v1674_v53, %v2071_v57  ;;  %1256 = vmatprep.mubr.bf16.mxu0 %v1113_v37 }
 0x37f   :  { %838 = vmax.xlane.f32.xlu1 %v2098_v54  ;;  %v803_v0 = vadd.f32 %v802_v59, %v801_v49  ;;  %v805_v1 = vadd.f32 %v804_v60, %v776_v50  ;;  %v777_v56 = vmul.f32 %v1676_v61, %v2073_v58 }
 0x380   :  { %840 = vmax.xlane.f32.xlu0 %v2101_v62  ;;  %v818_v2 = vrot.slane %v817_v63, 2  ;;  %v822_v3 = vrot.slane %v779_v55, 4 }
 0x381   :  { %v2108_v4 = vadd.f32 %v803_v0, %v2043_v10  ;;  %v806_v5 = vrot.slane %v805_v1, 2  ;;  %v810_v6 = vrot.slane %v777_v56, 4 }
 0x382   :  { %v819_v7 = vadd.f32 %v818_v2, %v817_v63  ;;  %v823_v8 = vadd.f32 %v822_v3, %v779_v55 }
 0x383   :  { %842 = vmax.xlane.f32.xlu1 %v2108_v4  ;;  %v807_v57 = vadd.f32 %v806_v5, %v805_v1  ;;  %v811_v9 = vadd.f32 %v810_v6, %v777_v56  ;;  %v2153_v5 = vpop.f32.mrb[20].mxu1  ;;  %v1621_v6 = vld [vmem:[#allocation11 + $0x60] sm:$0xff]  }
 0x384   :  { %v820_v11 = vrot.slane %v819_v7, 1  ;;  %v824_v12 = vrot.slane %v823_v8, 2 }
 0x385   :  { %v808_v13 = vrot.slane %v807_v57, 1  ;;  %v812_v14 = vrot.slane %v811_v9, 2 }
 0x386   :  { %v821_v58 = vadd.f32 %v820_v11, %v819_v7  ;;  %v825_v15 = vadd.f32 %v824_v12, %v823_v8  ;;  %v2158_v8 = vpop.f32.mrb[21].mxu1 }
 0x387   :  { %v809_v16 = vadd.f32 %v808_v13, %v807_v57  ;;  %v813_v17 = vadd.f32 %v812_v14, %v811_v9  ;;  %v1622_v57 = vld [vmem:[#allocation11 + $0x20] sm:$0xff]   ;;  %v2161_v9 = vpop.f32.mrb[22].mxu1  ;;  %v1623_v14 = vld [vmem:[#allocation11 + $0x68] sm:$0xff]  }
 0x388   :  { %v2112_v18 = vadd.f32 %v821_v58, %v2043_v10  ;;  %v826_v19 = vrot.slane %v825_v15, 1  ;;  %v2163_v11 = vpop.f32.mrb[23].mxu1 }
 0x389   :  { %v2115_v20 = vadd.f32 %v809_v16, %v2043_v10  ;;  %v814_v21 = vrot.slane %v813_v17, 1  ;;  %v1115_v13 = vpack.c.bf16 %v2163_v11, %v2158_v8  ;;  %v2173_v16 = vpop.f32.mrb[24].mxu1 }
 0x38a   :  { %848 = vmax.xlane.f32.xlu1 %v2112_v18  ;;  %v827_v22 = vadd.f32 %v826_v19, %v825_v15  ;;  %v1624_v15 = vld [vmem:[#allocation11 + $0x28] sm:$0xff]   ;;  %v1626_v19 = vld [vmem:[#allocation11 + $0x30] sm:$0xff]  }
 0x38b   :  { %844 = vmax.xlane.f32.xlu0 %v2115_v20  ;;  %v815_v23 = vadd.f32 %v814_v21, %v813_v17  ;;  %v1625_v17 = vld [vmem:[#allocation11 + $0x70] sm:$0xff]  }
 0x38c   :  { %v2120_v24 = vadd.f32 %v827_v22, %v2043_v10 }
 0x38d   :  { %v2123_v25 = vadd.f32 %v815_v23, %v2043_v10  ;;  %v1619_v10 = vld [vmem:[#allocation11 + $0x58] sm:$0xff]  }
 0x38e   :  { %850 = vmax.xlane.f32.xlu1 %v2120_v24  ;;  %1447 = vmatprep.subr.bf16.mxu0 %v1619_v10  ;;  %v1627_v23 = vld [vmem:[#allocation11 + $0x78] sm:$0xff]  }
 0x38f   :  { %846 = vmax.xlane.f32.xlu0 %v2123_v25  ;;  %1566 = vmatprep.subr.bf16.mxu1 %v1619_v10 }
 0x390   :  { %1448 = vmatpush3.bf16.msra.mxu0 %v1620_v32  ;;  %1574 = vmatpush3.bf16.msra.mxu1 %v1620_v32 }
 0x391   :  { %1449 = vmatprep.subr.bf16.mxu0 %v1621_v6  ;;  %1567 = vmatprep.subr.bf16.mxu1 %v1621_v6 }
 0x394   :  { %1450 = vmatpush3.bf16.msra.mxu0 %v1622_v57  ;;  %1575 = vmatpush3.bf16.msra.mxu1 %v1622_v57 }
 0x395   :  { %1451 = vmatprep.subr.bf16.mxu0 %v1623_v14  ;;  %1568 = vmatprep.subr.bf16.mxu1 %v1623_v14 }
 0x398   :  { %1452 = vmatpush3.bf16.msra.mxu0 %v1624_v15  ;;  %1576 = vmatpush3.bf16.msra.mxu1 %v1624_v15 }
 0x399   :  { %1453 = vmatprep.subr.bf16.mxu0 %v1625_v17  ;;  %1569 = vmatprep.subr.bf16.mxu1 %v1625_v17 }
 0x39c   :  { %1454 = vmatpush3.bf16.msra.mxu0 %v1626_v19  ;;  %1577 = vmatpush3.bf16.msra.mxu1 %v1626_v19 }
 0x39d   :  { %1455 = vmatprep.subr.bf16.mxu0 %v1627_v23  ;;  %1570 = vmatprep.subr.bf16.mxu1 %v1627_v23 }
 0x408   :  { %v837_v38 = vpop.xlane.xlu0 %836 }
 0x409   :  { %v852_v39 = vsub.f32 %v2092_v42, %v837_v38 }
 0x40b   :  { %v860_v40 = vmul.f32 1.442695, %v852_v39 }
 0x40c   :  { %v839_v41 = vpop.xlane.xlu1 %838 }
 0x40d   :  { %1677 = vpow2.f32 %v860_v40  ;;  %v853_v43 = vsub.f32 %v2098_v54, %v839_v41  ;;  %v841_v44 = vpop.xlane.xlu0 %840 }
 0x40e   :  { %v854_v45 = vsub.f32 %v2101_v62, %v841_v44 }
 0x40f   :  { %v862_v46 = vmul.f32 1.442695, %v853_v43 }
 0x410   :  { %v864_v47 = vmul.f32 1.442695, %v854_v45  ;;  %v843_v48 = vpop.xlane.xlu1 %842 }
 0x411   :  { %1679 = vpow2.f32 %v862_v46  ;;  %v855_v49 = vsub.f32 %v2108_v4, %v843_v48 }
 0x412   :  { %1681 = vpow2.f32 %v864_v47 }
 0x413   :  { %v866_v50 = vmul.f32 1.442695, %v855_v49 }
 0x415   :  { %1683 = vpow2.f32 %v866_v50 }
 0x417   :  { %v2135_v51 = vpop.eup %1677  ;;  %v849_v42 = vpop.xlane.xlu1 %848 }
 0x418   :  { %v858_v52 = vsub.f32 %v2112_v18, %v849_v42  ;;  %876 = vadd.xlane.f32.xlu0 %v2135_v51  ;;  %v845_v53 = vpop.xlane.xlu0 %844  ;;  %v2175_v18 = vpop.f32.mrb[25].mxu1 }
 0x419   :  { %v856_v54 = vsub.f32 %v2115_v20, %v845_v53  ;;  %v2177_v20 = vpop.f32.mrb[26].mxu1 }
 0x41a   :  { %v872_v59 = vmul.f32 1.442695, %v858_v52  ;;  %v2179_v21 = vpop.f32.mrb[27].mxu1 }
 0x41b   :  { %v2140_v60 = vpop.eup %1679  ;;  %v868_v61 = vmul.f32 1.442695, %v856_v54  ;;  %v851_v62 = vpop.xlane.xlu1 %850  ;;  %v1117_v22 = vpack.c.bf16 %v2179_v21, %v2175_v18 }
 0x41c   :  { %v2142_v63 = vpop.eup %1681  ;;  %1685 = vpow2.f32 %v872_v59  ;;  %v859_v55 = vsub.f32 %v2120_v24, %v851_v62  ;;  %878 = vadd.xlane.f32.xlu1 %v2140_v60  ;;  %v847_v0 = vpop.xlane.xlu0 %846  ;;  %v1628_v24 = vld [vmem:[#allocation11 + $0x38] sm:$0xff]  }
 0x41d   :  { %1687 = vpow2.f32 %v868_v61  ;;  %880 = vadd.xlane.f32.xlu0 %v2142_v63  ;;  %v857_v1 = vsub.f32 %v2123_v25, %v847_v0  ;;  %v2183_v25 = vpop.f32.mrb[28].mxu1  ;;  %1456 = vmatpush3.bf16.msra.mxu0 %v1628_v24 }
 0x41e   :  { %v874_v56 = vmul.f32 1.442695, %v859_v55  ;;  %v2185_v26 = vpop.f32.mrb[29].mxu1  ;;  %1578 = vmatpush3.bf16.msra.mxu1 %v1628_v24 }
 0x41f   :  { %v2148_v2 = vpop.eup %1683  ;;  %v870_v3 = vmul.f32 1.442695, %v857_v1  ;;  %v1051_v27 = vpop.f32.mrb[30].mxu1 }
 0x420   :  { %1689 = vpow2.f32 %v874_v56  ;;  %882 = vadd.xlane.f32.xlu1 %v2148_v2  ;;  %v2187_v28 = vpop.f32.mrb[31].mxu1 }
 0x421   :  { %1691 = vpow2.f32 %v870_v3  ;;  %v2189_v29 = vpop.f32.mrb[32].mxu1  ;;  %v1119_v31 = vpack.c.bf16 %v2187_v28, %v2185_v26 }
 0x422   :  { %v2191_v30 = vpop.f32.mrb[33].mxu1 }
 0x423   :  { %v2195_v10 = vpop.f32.mrb[34].mxu1 }
 0x424   :  { %v2197_v32 = vpop.f32.mrb[35].mxu1 }
 0x425   :  { %v2199_v34 = vpop.f32.mrb[36].mxu1  ;;  %v1121_v41 = vpack.c.bf16 %v2197_v32, %v2191_v30 }
 0x426   :  { %v2151_v4 = vpop.eup %1685  ;;  %v2201_v36 = vpop.f32.mrb[37].mxu1 }
 0x427   :  { %v2155_v7 = vpop.eup %1687  ;;  %888 = vadd.xlane.f32.xlu1 %v2151_v4  ;;  %v2203_v37 = vpop.f32.mrb[38].mxu1 }
 0x428   :  { %884 = vadd.xlane.f32.xlu0 %v2155_v7  ;;  %v2205_v38 = vpop.f32.mrb[39].mxu1 }
 0x429   :  { %v1077_v39 = vpop.f32.mrb[40].mxu1  ;;  %v1123_v49 = vpack.c.bf16 %v2205_v38, %v2201_v36 }
 0x42a   :  { %v2165_v12 = vpop.eup %1689  ;;  %v1079_v40 = vpop.f32.mrb[41].mxu1 }
 0x42b   :  { %v2169_v58 = vpop.eup %1691  ;;  %890 = vadd.xlane.f32.xlu1 %v2165_v12  ;;  %v1081_v43 = vpop.f32.mrb[42].mxu1 }
 0x42c   :  { %886 = vadd.xlane.f32.xlu0 %v2169_v58  ;;  %v1083_v44 = vpop.f32.mrb[43].mxu1 }
 0x42d   :  { %v1125_v45 = vpack.c.bf16 %v1083_v44, %v1079_v40  ;;  %v1087_v46 = vpop.f32.mrb[44].mxu1 }
 0x42e   :  { %v2209_v47 = vpop.f32.mrb[45].mxu1 }
 0x42f   :  { %v1091_v48 = vpop.f32.mrb[46].mxu1  ;;  %1304 = vmatprep.mubr.bf16.mxu1 %v1125_v45 }
 0x430   :  { %v1093_v50 = vpop.f32.mrb[47].mxu1 }
 0x431   :  { %v1127_v42 = vpack.c.bf16 %v1093_v50, %v2209_v47 }
 0x4a5   :  { %v877_v52 = vpop.xlane.xlu0 %876 }
 0x4a6   :  { %1693 = vrcp.f32 %v877_v52 }
 0x4a9   :  { %v879_v53 = vpop.xlane.xlu1 %878 }
 0x4aa   :  { %1695 = vrcp.f32 %v879_v53  ;;  %v881_v54 = vpop.xlane.xlu0 %880 }
 0x4ab   :  { %1697 = vrcp.f32 %v881_v54 }
 0x4ad   :  { %v883_v59 = vpop.xlane.xlu1 %882 }
 0x4ae   :  { %1699 = vrcp.f32 %v883_v59 }
 0x4b0   :  { %v1694_v61 = vpop.eup %1693 }
 0x4b1   :  { %v900_v62 = vmul.f32 %v1694_v61, %v2135_v51 }
 0x4b3   :  { %v1096_v55 = vmul.f32 %v2127_v33, %v900_v62  ;;  %v1097_v0 = vmul.f32 %v2129_v35, %v900_v62 }
 0x4b4   :  { %v1696_v1 = vpop.eup %1695  ;;  %v889_v56 = vpop.xlane.xlu1 %888 }
 0x4b5   :  { %v1698_v3 = vpop.eup %1697  ;;  %1701 = vrcp.f32 %v889_v56  ;;  %v885_v6 = vpop.xlane.xlu0 %884  ;;  %v1112_v57 = vpack.c.bf16 %v1097_v0, %v1096_v55  ;;  %v901_v14 = vmul.f32 %v1696_v1, %v2140_v60 }
 0x4b6   :  { %v902_v15 = vmul.f32 %v1698_v3, %v2142_v63  ;;  %1703 = vrcp.f32 %v885_v6 }
 0x4b7   :  { %1257 = vmatmul.mubr.bf16.vlgmr.msra.gmra.mrb[24].mxu0 %v1112_v57  ;;  %v1098_v17 = vmul.f32 %v2153_v5, %v901_v14  ;;  %v1099_v51 = vmul.f32 %v2161_v9, %v901_v14 }
 0x4b8   :  { %v1700_v19 = vpop.eup %1699  ;;  %v1100_v33 = vmul.f32 %v2173_v16, %v902_v15  ;;  %v1101_v35 = vmul.f32 %v2177_v20, %v902_v15  ;;  %v891_v23 = vpop.xlane.xlu1 %890  ;;  %1264 = vmatprep.mubr.bf16.mxu0 %v1115_v13 }
 0x4b9   :  { %v903_v60 = vmul.f32 %v1700_v19, %v2148_v2  ;;  %1705 = vrcp.f32 %v891_v23  ;;  %v887_v63 = vpop.xlane.xlu0 %886  ;;  %v1114_v24 = vpack.c.bf16 %v1099_v51, %v1098_v17 }
 0x4ba   :  { %v1116_v40 = vpack.c.bf16 %v1101_v35, %v1100_v33  ;;  %1707 = vrcp.f32 %v887_v63 }
 0x4bb   :  { %v1102_v5 = vmul.f32 %v2183_v25, %v903_v60  ;;  %v1103_v9 = vmul.f32 %v1051_v27, %v903_v60 }
 0x4bd   :  { %v1118_v44 = vpack.c.bf16 %v1103_v9, %v1102_v5 }
 0x4bf   :  { %v1702_v45 = vpop.eup %1701  ;;  %1265 = vmatmul.mubr.bf16.gmra.mrb[28].mxu0 %v1114_v24 }
 0x4c0   :  { %v1704_v16 = vpop.eup %1703  ;;  %v906_v20 = vmul.f32 %v1702_v45, %v2151_v4  ;;  %1272 = vmatprep.mubr.bf16.mxu0 %v1117_v22 }
 0x4c1   :  { %v904_v2 = vmul.f32 %v1704_v16, %v2155_v7 }
 0x4c2   :  { %v1108_v8 = vmul.f32 %v1077_v39, %v906_v20  ;;  %v1109_v11 = vmul.f32 %v1081_v43, %v906_v20 }
 0x4c3   :  { %v1706_v13 = vpop.eup %1705  ;;  %v1104_v47 = vmul.f32 %v2189_v29, %v904_v2  ;;  %v1105_v25 = vmul.f32 %v2195_v10, %v904_v2 }
 0x4c4   :  { %v1708_v27 = vpop.eup %1707  ;;  %v1124_v50 = vpack.c.bf16 %v1109_v11, %v1108_v8  ;;  %v907_v52 = vmul.f32 %v1706_v13, %v2165_v12 }
 0x4c5   :  { %v1120_v53 = vpack.c.bf16 %v1105_v25, %v1104_v47  ;;  %v905_v4 = vmul.f32 %v1708_v27, %v2169_v58 }
 0x4c6   :  { %v1110_v54 = vmul.f32 %v1087_v46, %v907_v52  ;;  %v1111_v59 = vmul.f32 %v1091_v48, %v907_v52  ;;  %1305 = vmatmul.mubr.bf16.vlgmr.msra.gmra.mrb[48].mxu1 %v1124_v50 }
 0x4c7   :  { %v1106_v18 = vmul.f32 %v2199_v34, %v905_v4  ;;  %v1107_v7 = vmul.f32 %v2203_v37, %v905_v4  ;;  %1273 = vmatmul.mubr.bf16.gmra.mrb[32].mxu0 %v1116_v40  ;;  %1312 = vmatprep.mubr.bf16.mxu1 %v1127_v42 }
 0x4c8   :  { %v1126_v21 = vpack.c.bf16 %v1111_v59, %v1110_v54  ;;  %1280 = vmatprep.mubr.bf16.mxu0 %v1119_v31 }
 0x4c9   :  { %v1122_v22 = vpack.c.bf16 %v1107_v7, %v1106_v18 }
 0x4ce   :  { %1313 = vmatmul.mubr.bf16.gmra.mrb[52].mxu1 %v1126_v21 }
 0x4cf   :  { %1281 = vmatmul.mubr.bf16.gmra.mrb[36].mxu0 %v1118_v44 }
 0x4d0   :  { %1288 = vmatprep.mubr.bf16.mxu0 %v1121_v41 }
 0x4d7   :  { %1289 = vmatmul.mubr.bf16.gmra.mrb[40].mxu0 %v1120_v53 }
 0x4d8   :  { %1296 = vmatprep.mubr.bf16.mxu0 %v1123_v49 }
 0x4df   :  { %1297 = vmatmul.mubr.bf16.gmra.mrb[44].mxu0 %v1122_v22 }
 0x58a   :  { %v1457_v12 = vpop.f32.mrb[24].mxu0 }
 0x58b   :  { %v1458_v58 = vpop.f32.mrb[25].mxu0 }
 0x58c   :  { %v1459_v29 = vadd.f32 %v1458_v58, %v1457_v12  ;;  %v1460_v10 = vpop.f32.mrb[26].mxu0 }
 0x58d   :  { %v1461_v34 = vpop.f32.mrb[27].mxu0 }
 0x58e   :  { %1321 = vst.msk [vmem:[#allocation13] sm:$0xff] %vm614_vm3, %v1459_v29  ;;  %v1462_v26 = vadd.f32 %v1461_v34, %v1460_v10 }
 0x590   :  { %1322 = vst.msk [vmem:[#allocation13 + $0x8] sm:$0xff] %vm614_vm3, %v1462_v26 }
 0x592   :  { %v1463_v28 = vpop.f32.mrb[28].mxu0 }
 0x593   :  { %v1464_v31 = vpop.f32.mrb[29].mxu0 }
 0x594   :  { %v1465_v30 = vadd.f32 %v1464_v31, %v1463_v28  ;;  %v1466_v32 = vpop.f32.mrb[30].mxu0 }
 0x595   :  { %v1467_v37 = vpop.f32.mrb[31].mxu0 }
 0x596   :  { %1323 = vst.msk [vmem:[#allocation13 + $0x10] sm:$0xff] %vm614_vm3, %v1465_v30  ;;  %v1468_v36 = vadd.f32 %v1467_v37, %v1466_v32 }
 0x598   :  { %1324 = vst.msk [vmem:[#allocation13 + $0x18] sm:$0xff] %vm614_vm3, %v1468_v36 }
 0x599   :  { %v1493_v38 = vpop.f32.mrb[48].mxu1 }
 0x59a   :  { %v1469_v39 = vpop.f32.mrb[32].mxu0  ;;  %v1494_v41 = vpop.f32.mrb[49].mxu1 }
 0x59b   :  { %v1495_v43 = vadd.f32 %v1494_v41, %v1493_v38  ;;  %v1470_v46 = vpop.f32.mrb[33].mxu0  ;;  %v1496_v48 = vpop.f32.mrb[50].mxu1 }
 0x59c   :  { %v1471_v49 = vadd.f32 %v1470_v46, %v1469_v39  ;;  %v1472_v42 = vpop.f32.mrb[34].mxu0  ;;  %v1497_v61 = vpop.f32.mrb[51].mxu1 }
 0x59d   :  { %1333 = vst.msk [vmem:[#allocation13 + $0x60] sm:$0xff] %vm614_vm3, %v1495_v43  ;;  %v1498_v62 = vadd.f32 %v1497_v61, %v1496_v48  ;;  %v1473_v55 = vpop.f32.mrb[35].mxu0 }
 0x59e   :  { %1325 = vst.msk [vmem:[#allocation13 + $0x20] sm:$0xff] %vm614_vm3, %v1471_v49  ;;  %v1474_v0 = vadd.f32 %v1473_v55, %v1472_v42 }
 0x59f   :  { %1334 = vst.msk [vmem:[#allocation13 + $0x68] sm:$0xff] %vm614_vm3, %v1498_v62 }
 0x5a0   :  { %1326 = vst.msk [vmem:[#allocation13 + $0x28] sm:$0xff] %vm614_vm3, %v1474_v0 }
 0x5a1   :  { %v1499_v1 = vpop.f32.mrb[52].mxu1 }
 0x5a2   :  { %v1475_v56 = vpop.f32.mrb[36].mxu0  ;;  %v1500_v3 = vpop.f32.mrb[53].mxu1 }
 0x5a3   :  { %v1501_v6 = vadd.f32 %v1500_v3, %v1499_v1  ;;  %v1476_v57 = vpop.f32.mrb[37].mxu0  ;;  %v1502_v14 = vpop.f32.mrb[54].mxu1 }
 0x5a4   :  { %v1477_v15 = vadd.f32 %v1476_v57, %v1475_v56  ;;  %v1478_v17 = vpop.f32.mrb[38].mxu0  ;;  %v1503_v51 = vpop.f32.mrb[55].mxu1 }
 0x5a5   :  { %1335 = vst.msk [vmem:[#allocation13 + $0x70] sm:$0xff] %vm614_vm3, %v1501_v6  ;;  %v1504_v19 = vadd.f32 %v1503_v51, %v1502_v14  ;;  %v1479_v33 = vpop.f32.mrb[39].mxu0 }
 0x5a6   :  { %1327 = vst.msk [vmem:[#allocation13 + $0x30] sm:$0xff] %vm614_vm3, %v1477_v15  ;;  %v1480_v35 = vadd.f32 %v1479_v33, %v1478_v17 }
 0x5a7   :  { %1336 = vst.msk [vmem:[#allocation13 + $0x78] sm:$0xff] %vm614_vm3, %v1504_v19 }
 0x5a8   :  { %1328 = vst.msk [vmem:[#allocation13 + $0x38] sm:$0xff] %vm614_vm3, %v1480_v35 }
 0x5aa   :  { %v1481_v23 = vpop.f32.mrb[40].mxu0 }
 0x5ab   :  { %v1482_v60 = vpop.f32.mrb[41].mxu0 }
 0x5ac   :  { %v1483_v63 = vadd.f32 %v1482_v60, %v1481_v23  ;;  %v1484_v24 = vpop.f32.mrb[42].mxu0 }
 0x5ad   :  { %v1485_v40 = vpop.f32.mrb[43].mxu0 }
 0x5ae   :  { %1329 = vst.msk [vmem:[#allocation13 + $0x40] sm:$0xff] %vm614_vm3, %v1483_v63  ;;  %v1486_v5 = vadd.f32 %v1485_v40, %v1484_v24 }
 0x5b0   :  { %1330 = vst.msk [vmem:[#allocation13 + $0x48] sm:$0xff] %vm614_vm3, %v1486_v5 }
 0x5b2   :  { %v1487_v9 = vpop.f32.mrb[44].mxu0 }
 0x5b3   :  { %v1488_v44 = vpop.f32.mrb[45].mxu0 }
 0x5b4   :  { %v1489_v45 = vadd.f32 %v1488_v44, %v1487_v9  ;;  %v1490_v16 = vpop.f32.mrb[46].mxu0 }
 0x5b5   :  { %v1491_v20 = vpop.f32.mrb[47].mxu0 }
 0x5b6   :  { %1331 = vst.msk [vmem:[#allocation13 + $0x50] sm:$0xff] %vm614_vm3, %v1489_v45  ;;  %v1492_v2 = vadd.f32 %v1491_v20, %v1490_v16 }
 0x5b8   :  { %1332 = vst.msk [vmem:[#allocation13 + $0x58] sm:$0xff] %vm614_vm3, %v1492_v2 }
 0x5b9   :  { %1852 = shalt.err (!%p1849_p10)
}
 0x5ba   :  { %s1853_s1 = scalar_lea.hbm %s2282_s6, 2048 }
 0x5bb   :  { %p1854_p11 = scmp.ne.s32.totalorder %s2282_s6, %s1853_s1  ;;  %p1857_p12 = scmp.lt.u32.totalorder %s1853_s1, %s2282_s6 }
 0x5bd   :  { %p1859_p13 = pnand %p1857_p12, %p1854_p11 }
 0x5bf   :  { %1862 = shalt.err (!%p1859_p13)
}
 0x5c0   :  { %s1886_s27 = smov 128   ;;  %s1887_s28 = smov 8  }
 0x5c1   :  { %1348 = dma.vmem_to_hbm [thread:$0]  %s1343_s9, 2048, %s2282_s6, [#allocation4], %s1886_s27, %s1886_s27, %s1887_s28  }
 0x5c2   :  { %1871 = dma.done.wait [#allocation4], 2048  }
 0x5c3   :  { %1872 = vsyncadd [#allocation4], 4294965248 }
 0x5c4   :  { %1352 = vsyncpa [#allocation3], 1 }
 0x5c5   :  { %1353 = vsyncpa [#allocation6], 1 }
 0x5c6   :  { %1354 = vsyncpa [#allocation9], 1 }
 0x5c7   :  { %1355 = vsyncpa [#allocation12], 1 }
 0x5c8   :  { %1356 = vsyncpa [#allocation4], 1 }

// kernel: tpu_custom_call.1
= control target key start
LH: loop header
LB: loop body
LE: loop exit
PB: predicated region body
PF: predicated region fallthrough
CT: control target
= control target key end

     0   :  { %11 = vsyncpa [#allocation3], 0  ;;  %s2276_s0 = inlined_call_operand.hbm [shape: bf16[8,8,16], index: 0, kind: input, shape index: {}]   ;;  %s2277_s1 = inlined_call_operand.hbm [shape: bf16[8,16,8], index: 1, kind: input, shape index: {}]   ;;  %s2278_s2 = inlined_call_operand.hbm [shape: bf16[8,16,8], index: 2, kind: input, shape index: {}]   ;;  %s2279_s3 = inlined_call_operand.hbm [shape: bf16[8,128], index: 3, kind: input, shape index: {}]   ;;  %s2280_s4 = inlined_call_operand.hbm [shape: bf16[8,256], index: 4, kind: input, shape index: {}]   ;;  %s2281_s5 = inlined_call_operand.hbm [shape: bf16[256,8], index: 5, kind: input, shape index: {}]   ;;  %s2282_s6 = inlined_call_operand.hbm [shape: f32[8,16,8], index: 6, kind: output, shape index: {}]  }
   0x1   :  { %12 = vsyncpa [#allocation6], 0 }
   0x2   :  { %13 = vsyncpa [#allocation9], 0 }
   0x3   :  { %14 = vsyncpa [#allocation12], 0 }
   0x4   :  { %15 = vsyncpa [#allocation4], 0  ;;  %s1873_s21 = smov [#allocation5]   ;;  %s1874_s23 = smov [#allocation8]  }
   0x5   :  { %s33_s22 = sshll.u32 %s1873_s21, 4  ;;  %s58_s24 = sshll.u32 %s1874_s23, 4  ;;  %s34_s22 = int_to_ptr.vmem [resolvable:$true] %s33_s22  ;;  %s59_s24 = int_to_ptr.vmem [resolvable:$true] %s58_s24 }
   0x6   :  { %s1709_s27 = scalar_lea.hbm %s2277_s1, 1024 }
   0x7   :  { %p1710_p0 = scmp.ne.s32.totalorder %s2277_s1, %s1709_s27  ;;  %p1713_p1 = scmp.lt.u32.totalorder %s1709_s27, %s2277_s1 }
   0x9   :  { %p1715_p2 = pnand %p1713_p1, %p1710_p0 }
   0xb   :  { %1718 = shalt.err (!%p1715_p2)
}
   0xc   :  { %s1719_s8 = scalar_lea.vmem %s34_s22, 1024  ;;  %p1724_p4 = scmp.lt.s32.totalorder %s34_s22, %s34_s22 }
   0xd   :  { %p1720_p3 = scmp.ne.s32.totalorder %s34_s22, %s1719_s8  ;;  %p1725_p5 = scmp.lt.s32.totalorder %s1719_s8, %s1719_s8 }
   0xf   :  { %p1726_p6 = por %p1725_p5, %p1724_p4 }
  0x11   :  { %p1727_p7 = pnand %p1726_p6, %p1720_p3 }
  0x13   :  { %1730 = shalt.err (!%p1727_p7)
}
  0x14   :  { %s1875_s9 = smov 64   ;;  %s1876_s10 = smov 4  }
  0x15   :  { %39 = dma.hbm_to_vmem [thread:$0]  %s2277_s1, 1024, %s34_s22, [#allocation6], %s1875_s9, %s1875_s9, %s1876_s10  }
  0x16   :  { %s1731_s15 = scalar_lea.hbm %s2279_s3, 64 }
  0x17   :  { %p1732_p8 = scmp.ne.s32.totalorder %s2279_s3, %s1731_s15  ;;  %p1735_p9 = scmp.lt.u32.totalorder %s1731_s15, %s2279_s3 }
  0x19   :  { %p1737_p10 = pnand %p1735_p9, %p1732_p8 }
  0x1b   :  { %1740 = shalt.err (!%p1737_p10)
}
  0x1c   :  { %s1741_s20 = scalar_lea.vmem %s59_s24, 64  ;;  %p1746_p12 = scmp.lt.s32.totalorder %s59_s24, %s59_s24 }
  0x1d   :  { %p1742_p11 = scmp.ne.s32.totalorder %s59_s24, %s1741_s20  ;;  %p1747_p13 = scmp.lt.s32.totalorder %s1741_s20, %s1741_s20 }
  0x1f   :  { %p1748_p0 = por %p1747_p13, %p1746_p12 }
  0x21   :  { %p1749_p1 = pnand %p1748_p0, %p1742_p11 }
  0x23   :  { %1752 = shalt.err (!%p1749_p1)
}
  0x24   :  { %61 = dma.hbm_to_vmem [thread:$0]  %s2279_s3, 64, %s59_s24, [#allocation9]  }
  0x25   :  { %s1877_s22 = smov [#allocation2]   ;;  %s1878_s25 = smov [#allocation7]  }
  0x26   :  { %s21_s23 = sshll.u32 %s1877_s22, 4  ;;  %s45_s26 = sshll.u32 %s1878_s25, 4  ;;  %s22_s23 = int_to_ptr.vmem [resolvable:$true] %s21_s23  ;;  %s1950_s26 = int_to_ptr.vmem [resolvable:$true] %s45_s26 }
  0x27   :  { %s1753_s29 = scalar_lea.hbm %s2276_s0, 512 }
  0x28   :  { %p1754_p2 = scmp.ne.s32.totalorder %s2276_s0, %s1753_s29  ;;  %p1757_p3 = scmp.lt.u32.totalorder %s1753_s29, %s2276_s0 }
  0x2a   :  { %p1759_p4 = pnand %p1757_p3, %p1754_p2 }
  0x2c   :  { %1762 = shalt.err (!%p1759_p4)
}
  0x2d   :  { %s1763_s3 = scalar_lea.vmem %s22_s23, 512  ;;  %p1768_p6 = scmp.lt.s32.totalorder %s22_s23, %s22_s23 }
  0x2e   :  { %p1764_p5 = scmp.ne.s32.totalorder %s22_s23, %s1763_s3  ;;  %p1769_p7 = scmp.lt.s32.totalorder %s1763_s3, %s1763_s3 }
  0x30   :  { %p1770_p8 = por %p1769_p7, %p1768_p6 }
  0x32   :  { %p1771_p9 = pnand %p1770_p8, %p1764_p5 }
  0x34   :  { %1774 = shalt.err (!%p1771_p9)
}
  0x35   :  { %27 = dma.hbm_to_vmem [thread:$0]  %s2276_s0, 512, %s22_s23, [#allocation3], %s1875_s9, %s1875_s9, %s1876_s10  }
  0x36   :  { %s1775_s15 = scalar_lea.hbm %s2278_s2, 1024 }
  0x37   :  { %p1776_p10 = scmp.ne.s32.totalorder %s2278_s2, %s1775_s15  ;;  %p1779_p11 = scmp.lt.u32.totalorder %s1775_s15, %s2278_s2 }
  0x39   :  { %p1781_p12 = pnand %p1779_p11, %p1776_p10 }
  0x3b   :  { %1784 = shalt.err (!%p1781_p12)
}
  0x3c   :  { %s1785_s20 = scalar_lea.vmem %s1950_s26, 1024  ;;  %p1790_p0 = scmp.lt.s32.totalorder %s1950_s26, %s1950_s26 }
  0x3d   :  { %p1786_p13 = scmp.ne.s32.totalorder %s1950_s26, %s1785_s20  ;;  %p1791_p1 = scmp.lt.s32.totalorder %s1785_s20, %s1785_s20 }
  0x3f   :  { %p1792_p2 = por %p1791_p1, %p1790_p0 }
  0x41   :  { %p1793_p3 = pnand %p1792_p2, %p1786_p13 }
  0x43   :  { %1796 = shalt.err (!%p1793_p3)
}
  0x44   :  { %51 = dma.hbm_to_vmem [thread:$0]  %s2278_s2, 1024, %s1950_s26, [#allocation6], %s1875_s9, %s1875_s9, %s1876_s10  }
  0x45   :  { %s1879_s21 = smov [#allocation10]   ;;  %s1880_s23 = smov [#allocation11]  }
  0x46   :  { %s68_s22 = sshll.u32 %s1879_s21, 4  ;;  %s77_s25 = sshll.u32 %s1880_s23, 4  ;;  %s69_s22 = int_to_ptr.vmem [resolvable:$true] %s68_s22  ;;  %s1987_s25 = int_to_ptr.vmem [resolvable:$true] %s77_s25 }
  0x47   :  { %s1797_s29 = scalar_lea.hbm %s2280_s4, 128 }
  0x48   :  { %p1798_p4 = scmp.ne.s32.totalorder %s2280_s4, %s1797_s29  ;;  %p1801_p5 = scmp.lt.u32.totalorder %s1797_s29, %s2280_s4 }
  0x4a   :  { %p1803_p6 = pnand %p1801_p5, %p1798_p4 }
  0x4c   :  { %1806 = shalt.err (!%p1803_p6)
}
  0x4d   :  { %s1807_s2 = scalar_lea.vmem %s69_s22, 128  ;;  %p1812_p8 = scmp.lt.s32.totalorder %s69_s22, %s69_s22 }
  0x4e   :  { %p1808_p7 = scmp.ne.s32.totalorder %s69_s22, %s1807_s2  ;;  %p1813_p9 = scmp.lt.s32.totalorder %s1807_s2, %s1807_s2 }
  0x50   :  { %p1814_p10 = por %p1813_p9, %p1812_p8 }
  0x52   :  { %p1815_p11 = pnand %p1814_p10, %p1808_p7 }
  0x54   :  { %1818 = shalt.err (!%p1815_p11)
}
  0x55   :  { %71 = dma.hbm_to_vmem [thread:$0]  %s2280_s4, 128, %s69_s22, [#allocation9]  }
  0x56   :  { %s1819_s13 = scalar_lea.hbm %s2281_s5, 2048 }
  0x57   :  { %p1820_p12 = scmp.ne.s32.totalorder %s2281_s5, %s1819_s13  ;;  %p1823_p13 = scmp.lt.u32.totalorder %s1819_s13, %s2281_s5 }
  0x59   :  { %p1825_p0 = pnand %p1823_p13, %p1820_p12 }
  0x5b   :  { %1828 = shalt.err (!%p1825_p0)
}
  0x5c   :  { %s1829_s18 = scalar_lea.vmem %s1987_s25, 2048  ;;  %p1834_p2 = scmp.lt.s32.totalorder %s1987_s25, %s1987_s25 }
  0x5d   :  { %p1830_p1 = scmp.ne.s32.totalorder %s1987_s25, %s1829_s18  ;;  %p1835_p3 = scmp.lt.s32.totalorder %s1829_s18, %s1829_s18 }
  0x5f   :  { %p1836_p4 = por %p1835_p3, %p1834_p2 }
  0x61   :  { %p1837_p5 = pnand %p1836_p4, %p1830_p1 }
  0x63   :  { %1840 = shalt.err (!%p1837_p5)
}
  0x64   :  { %83 = dma.hbm_to_vmem [thread:$0]  %s2281_s5, 2048, %s1987_s25, [#allocation12], %s1875_s9, %s1875_s9, %s1876_s10  }
  0x65   :  { %1863 = dma.done.wait [#allocation3], 512  }
  0x66   :  { %1864 = vsyncadd [#allocation3], 4294966784 }
  0x67   :  { %1865 = dma.done.wait [#allocation6], 2048  }
  0x68   :  { %1866 = vsyncadd [#allocation6], 4294965248 }
  0x69   :  { %1867 = dma.done.wait [#allocation9], 192  }
  0x6a   :  { %1868 = vsyncadd [#allocation9], 4294967104 }
  0x6b   :  { %1869 = dma.done.wait [#allocation12], 2048  }
  0x6c   :  { %1870 = vsyncadd [#allocation12], 4294965248  ;;  %v1881_v0 = vmov 0.0   ;;  %vm1882_vm0 = vmmov 0   ;;  %v1595_v1 = vld [vmem:[#allocation5] sm:$0xff]   ;;  %v1596_v2 = vld [vmem:[#allocation5 + $0x8] sm:$0xff]  }
  0x6d   :  { %1505 = vmatprep.subr.bf16.mxu0 %v1881_v0  ;;  %1511 = vmatprep.subr.bf16.mxu1 %v1881_v0  ;;  %vm183_vm1 = vcmask 130048   ;;  %v103_v3 = vld [vmem:[#allocation2] sm:$0xf]  ;;  %v104_v4 = vld [vmem:[#allocation2 + $0x4] sm:$0xf]  ;;  %v1597_v5 = vld [vmem:[#allocation5 + $0x10] sm:$0xff]  }
  0x6e   :  { %1507 = vmatprep.mubr.msk.bf16.mxu0 %vm1882_vm0, %v1881_v0  ;;  %1513 = vmatprep.mubr.msk.bf16.mxu1 %vm1882_vm0, %v1881_v0  ;;  %v1598_v6 = vld [vmem:[#allocation5 + $0x18] sm:$0xff]   ;;  %v105_v7 = vld [vmem:[#allocation2 + $0x8] sm:$0xf]  ;;  %v106_v8 = vld [vmem:[#allocation2 + $0xc] sm:$0xf]  ;;  %vm627_vm2 = vcmask 1043456  }
  0x6f   :  { %1506 = vmatpush3.bf16.msra.mxu0 %v1595_v1  ;;  %1512 = vmatpush3.bf16.msra.mxu1 %v1596_v2  ;;  %v1599_v9 = vld [vmem:[#allocation5 + $0x20] sm:$0xff]   ;;  %v1600_v10 = vld [vmem:[#allocation5 + $0x28] sm:$0xff]   ;;  %v107_v11 = vld [vmem:[#allocation2 + $0x10] sm:$0xf]  ;;  %vm614_vm3 = vcmask 64512   ;;  %s1885_s5 = smov [#allocation13]  }
  0x70   :  { %1517 = vmatprep.subr.bf16.mxu0 %v1881_v0  ;;  %1523 = vmatprep.subr.bf16.mxu1 %v1881_v0  ;;  %v1601_v12 = vld [vmem:[#allocation5 + $0x30] sm:$0xff]   ;;  %v1602_v14 = vld [vmem:[#allocation5 + $0x38] sm:$0xff]   ;;  %v143_v17 = vld [vmem:[#allocation8] sm:$0xf]  ;;  %s1342_s9 = sshll.u32 %s1885_s5, 4  ;;  %s1343_s9 = int_to_ptr.vmem [resolvable:$true] %s1342_s9 }
  0x71   :  { %v108_v13 = vld [vmem:[#allocation2 + $0x14] sm:$0xf]  ;;  %v109_v15 = vld [vmem:[#allocation2 + $0x18] sm:$0xf]  ;;  %v110_v16 = vld [vmem:[#allocation2 + $0x1c] sm:$0xf]  ;;  %p1846_p7 = scmp.lt.s32.totalorder %s1343_s9, %s1343_s9 }
  0x72   :  { %1508 = vmatmul.mubr.msk.bf16.vlgmr.msra.gmra.mrb[0].mxu0 %vm183_vm1, %v103_v3  ;;  %1514 = vmatmul.mubr.msk.bf16.vlgmr.msra.gmra.mrb[0].mxu1 %vm183_vm1, %v104_v4  ;;  %v629_v18 = vsel %vm627_vm2, %v143_v17, 0  ;;  %s1841_s10 = scalar_lea.vmem %s1343_s9, 2048 }
  0x73   :  { %1518 = vmatpush3.bf16.msra.mxu0 %v1597_v5  ;;  %1524 = vmatpush3.bf16.msra.mxu1 %v1598_v6  ;;  %p1842_p6 = scmp.ne.s32.totalorder %s1343_s9, %s1841_s10  ;;  %p1847_p8 = scmp.lt.s32.totalorder %s1841_s10, %s1841_s10 }
  0x74   :  { %1519 = vmatprep.mubr.msk.bf16.mxu0 %vm1882_vm0, %v1881_v0  ;;  %1525 = vmatprep.mubr.msk.bf16.mxu1 %vm1882_vm0, %v1881_v0 }
  0x75   :  { %1529 = vmatprep.subr.bf16.mxu0 %v1881_v0  ;;  %1535 = vmatprep.subr.bf16.mxu1 %v1881_v0  ;;  %p1848_p9 = por %p1847_p8, %p1846_p7 }
  0x77   :  { %p1849_p10 = pnand %p1848_p9, %p1842_p6 }
  0x7a   :  { %1520 = vmatmul.mubr.msk.bf16.vlgmr.msra.gmra.mrb[4].mxu0 %vm183_vm1, %v105_v7  ;;  %1526 = vmatmul.mubr.msk.bf16.vlgmr.msra.gmra.mrb[4].mxu1 %vm183_vm1, %v106_v8  ;;  %v696_v7 = vlaneseq }
  0x7b   :  { %1530 = vmatpush3.bf16.msra.mxu0 %v1599_v9  ;;  %1536 = vmatpush3.bf16.msra.mxu1 %v1600_v10  ;;  %v1883_v9 = vmov -1e+30  }
  0x7c   :  { %1531 = vmatprep.mubr.msk.bf16.mxu0 %vm1882_vm0, %v1881_v0  ;;  %1537 = vmatprep.mubr.msk.bf16.mxu1 %vm1882_vm0, %v1881_v0  ;;  %v697_v8 = vand.u32 127, %v696_v7  ;;  %v1612_v7 = vld [vmem:[#allocation7 + $0x38] sm:$0xff]  }
  0x7d   :  { %1541 = vmatprep.subr.bf16.mxu0 %v1881_v0  ;;  %1547 = vmatprep.subr.bf16.mxu1 %v1881_v0 }
  0x7e   :  { %vm698_vm4 = vcmp.lt.s32.totalorder %v697_v8, 5 }
  0x7f   :  { %v2043_v10 = vsel %vm698_vm4, 0.0, %v1883_v9 }
  0x82   :  { %1532 = vmatmul.mubr.msk.bf16.vlgmr.msra.gmra.mrb[8].mxu0 %vm183_vm1, %v107_v11  ;;  %1538 = vmatmul.mubr.msk.bf16.vlgmr.msra.gmra.mrb[8].mxu1 %vm183_vm1, %v108_v13 }
  0x83   :  { %1542 = vmatpush3.bf16.msra.mxu0 %v1601_v12  ;;  %1548 = vmatpush3.bf16.msra.mxu1 %v1602_v14 }
  0x84   :  { %1543 = vmatprep.mubr.msk.bf16.mxu0 %vm1882_vm0, %v1881_v0  ;;  %1549 = vmatprep.mubr.msk.bf16.mxu1 %vm1882_vm0, %v1881_v0 }
  0x85   :  { %1579 = vmatprep.subr.msk.bf16.mxu0 %vm627_vm2, %v143_v17 }
  0x8a   :  { %1544 = vmatmul.mubr.msk.bf16.vlgmr.msra.gmra.mrb[12].mxu0 %vm183_vm1, %v109_v15  ;;  %1550 = vmatmul.mubr.msk.bf16.vlgmr.msra.gmra.mrb[12].mxu1 %vm183_vm1, %v110_v16 }
  0x8b   :  { %1554 = vmatpush3.bf16.msra.mxu0 %v629_v18 }
 0x145   :  { %v221_v19 = vpop.f32.mrb[0].mxu0  ;;  %v270_v21 = vpop.f32.mrb[0].mxu1 }
 0x146   :  { %v570_v20 = vmul.f32 1.442695, %v221_v19  ;;  %v1509_v22 = vpop.f32.mrb[1].mxu0  ;;  %v572_v23 = vmul.f32 1.442695, %v270_v21  ;;  %v1515_v24 = vpop.f32.mrb[1].mxu1 }
 0x147   :  { %v224_v25 = vpop.f32.mrb[2].mxu0  ;;  %v273_v26 = vpop.f32.mrb[2].mxu1 }
 0x148   :  { %1629 = vpow2.f32 %v570_v20  ;;  %v1510_v27 = vpop.f32.mrb[3].mxu0  ;;  %v1516_v28 = vpop.f32.mrb[3].mxu1 }
 0x149   :  { %1631 = vpow2.f32 %v572_v23 }
 0x14d   :  { %v319_v29 = vpop.f32.mrb[4].mxu0  ;;  %v368_v31 = vpop.f32.mrb[4].mxu1 }
 0x14e   :  { %v574_v30 = vmul.f32 1.442695, %v319_v29  ;;  %v1521_v32 = vpop.f32.mrb[5].mxu0  ;;  %v576_v33 = vmul.f32 1.442695, %v368_v31  ;;  %v1527_v34 = vpop.f32.mrb[5].mxu1 }
 0x14f   :  { %v322_v35 = vpop.f32.mrb[6].mxu0  ;;  %v371_v36 = vpop.f32.mrb[6].mxu1 }
 0x150   :  { %1633 = vpow2.f32 %v574_v30  ;;  %v1522_v37 = vpop.f32.mrb[7].mxu0  ;;  %v1528_v38 = vpop.f32.mrb[7].mxu1 }
 0x151   :  { %1635 = vpow2.f32 %v576_v33 }
 0x152   :  { %v1630_v39 = vpop.eup %1629 }
 0x153   :  { %v1632_v40 = vpop.eup %1631 }
 0x154   :  { %v1416_v41 = vpack.c.bf16 %v1632_v40, %v1630_v39 }
 0x155   :  { %v417_v42 = vpop.f32.mrb[8].mxu0  ;;  %v466_v44 = vpop.f32.mrb[8].mxu1 }
 0x156   :  { %1555 = vmatprep.mubr.msk.bf16.mxu0 %vm614_vm3, %v1416_v41  ;;  %v578_v43 = vmul.f32 1.442695, %v417_v42  ;;  %v1533_v45 = vpop.f32.mrb[9].mxu0  ;;  %v580_v46 = vmul.f32 1.442695, %v466_v44  ;;  %v1539_v47 = vpop.f32.mrb[9].mxu1 }
 0x157   :  { %v420_v48 = vpop.f32.mrb[10].mxu0  ;;  %v469_v49 = vpop.f32.mrb[10].mxu1 }
 0x158   :  { %1637 = vpow2.f32 %v578_v43  ;;  %v1534_v50 = vpop.f32.mrb[11].mxu0  ;;  %v1540_v51 = vpop.f32.mrb[11].mxu1 }
 0x159   :  { %1639 = vpow2.f32 %v580_v46 }
 0x15a   :  { %v1634_v52 = vpop.eup %1633 }
 0x15b   :  { %v1636_v53 = vpop.eup %1635 }
 0x15c   :  { %v1417_v54 = vpack.c.bf16 %v1636_v53, %v1634_v52 }
 0x15d   :  { %v515_v55 = vpop.f32.mrb[12].mxu0  ;;  %v564_v57 = vpop.f32.mrb[12].mxu1 }
 0x15e   :  { %v582_v56 = vmul.f32 1.442695, %v515_v55  ;;  %1556 = vmatmul.mubr.msk.bf16.vlgmr.msra.gmra.mrb[16].mxu0 %vm614_vm3, %v1417_v54  ;;  %v1545_v58 = vpop.f32.mrb[13].mxu0  ;;  %v584_v59 = vmul.f32 1.442695, %v564_v57  ;;  %v1551_v60 = vpop.f32.mrb[13].mxu1 }
 0x15f   :  { %v518_v61 = vpop.f32.mrb[14].mxu0  ;;  %v567_v62 = vpop.f32.mrb[14].mxu1 }
 0x160   :  { %1641 = vpow2.f32 %v582_v56  ;;  %v1546_v63 = vpop.f32.mrb[15].mxu0  ;;  %v1552_v0 = vpop.f32.mrb[15].mxu1  ;;  %v1884_v62 = vmov 0  }
 0x161   :  { %1643 = vpow2.f32 %v584_v59  ;;  %v144_v59 = vld [vmem:[#allocation10] sm:$0xff]  ;;  %1015 = vmatprep.mubr.bf16.mxu1 %v1884_v62 }
 0x162   :  { %v1638_v1 = vpop.eup %1637  ;;  %v1390_v60 = vcombine.high %v144_v59, %v144_v59  ;;  %v1389_v61 = vcombine.low %v144_v59, %v144_v59  ;;  %v1605_v0 = vld [vmem:[#allocation7] sm:$0xff]  }
 0x163   :  { %v1640_v2 = vpop.eup %1639 }
 0x164   :  { %v1418_v3 = vpack.c.bf16 %v1640_v2, %v1638_v1  ;;  %1391 = vmatprep.subr.msk.bf16.mxu1 %vm627_vm2, %v1390_v60  ;;  %v978_v63 = vsel %vm627_vm2, %v1389_v61, 0  ;;  %v1606_v1 = vld [vmem:[#allocation7 + $0x8] sm:$0xff]   ;;  %v1607_v2 = vld [vmem:[#allocation7 + $0x10] sm:$0xff]  }
 0x165   :  { %984 = vmatpush1.bf16.msra.mxu1 %v978_v63 }
 0x166   :  { %1559 = vmatprep.mubr.msk.bf16.mxu0 %vm614_vm3, %v1418_v3  ;;  %v1608_v3 = vld [vmem:[#allocation7 + $0x18] sm:$0xff]  }
 0x168   :  { %1392 = vmatmul.mubr.msk.bf16.vlgmr.msra.gmra.mrb[16].mxu1 %vm614_vm3, %v1605_v0 }
 0x169   :  { %1025 = vmatprep.mubr.bf16.mxu1 %v1884_v62 }
 0x16a   :  { %v1642_v4 = vpop.eup %1641 }
 0x16b   :  { %v1644_v5 = vpop.eup %1643 }
 0x16c   :  { %v1419_v6 = vpack.c.bf16 %v1644_v5, %v1642_v4  ;;  %v1609_v4 = vld [vmem:[#allocation7 + $0x20] sm:$0xff]   ;;  %v1610_v5 = vld [vmem:[#allocation7 + $0x28] sm:$0xff]  }
 0x16e   :  { %1560 = vmatmul.mubr.msk.bf16.gmra.mrb[20].mxu0 %vm614_vm3, %v1419_v6  ;;  %v1611_v6 = vld [vmem:[#allocation7 + $0x30] sm:$0xff]  }
 0x170   :  { %1393 = vmatmul.mubr.msk.bf16.gmra.mrb[20].mxu1 %vm614_vm3, %v1606_v1 }
 0x171   :  { %1035 = vmatprep.mubr.bf16.mxu1 %v1884_v62 }
 0x178   :  { %1394 = vmatmul.mubr.msk.bf16.gmra.mrb[24].mxu1 %vm614_vm3, %v1607_v2 }
 0x179   :  { %1045 = vmatprep.mubr.bf16.mxu1 %v1884_v62 }
 0x180   :  { %1395 = vmatmul.mubr.msk.bf16.gmra.mrb[28].mxu1 %vm614_vm3, %v1608_v3 }
 0x181   :  { %1055 = vmatprep.mubr.bf16.mxu1 %v1884_v62 }
 0x188   :  { %1396 = vmatmul.mubr.msk.bf16.gmra.mrb[32].mxu1 %vm614_vm3, %v1609_v4 }
 0x189   :  { %1065 = vmatprep.mubr.bf16.mxu1 %v1884_v62 }
 0x190   :  { %1397 = vmatmul.mubr.msk.bf16.gmra.mrb[36].mxu1 %vm614_vm3, %v1610_v5 }
 0x191   :  { %1075 = vmatprep.mubr.bf16.mxu1 %v1884_v62 }
 0x198   :  { %1398 = vmatmul.mubr.msk.bf16.gmra.mrb[40].mxu1 %vm614_vm3, %v1611_v6 }
 0x199   :  { %1085 = vmatprep.mubr.bf16.mxu1 %v1884_v62 }
 0x1a0   :  { %1399 = vmatmul.mubr.msk.bf16.gmra.mrb[44].mxu1 %vm614_vm3, %v1612_v7 }
 0x231   :  { %v1557_v11 = vpop.f32.mrb[16].mxu0 }
 0x232   :  { %v702_v12 = vadd.f32 %v1557_v11, %v2043_v10  ;;  %v665_v13 = vpop.f32.mrb[17].mxu0 }
 0x233   :  { %v700_v14 = vadd.f32 %v2043_v10, %v665_v13  ;;  %v1558_v15 = vpop.f32.mrb[18].mxu0 }
 0x234   :  { %712 = vmax.xlane.f32.xlu1 %v702_v12  ;;  %v668_v16 = vpop.f32.mrb[19].mxu0  ;;  %v703_v17 = vadd.f32 %v1558_v15, %v2043_v10 }
 0x235   :  { %708 = vmax.xlane.f32.xlu0 %v700_v14  ;;  %v701_v18 = vadd.f32 %v2043_v10, %v668_v16 }
 0x238   :  { %714 = vmax.xlane.f32.xlu1 %v703_v17 }
 0x239   :  { %710 = vmax.xlane.f32.xlu0 %v701_v18 }
 0x241   :  { %v1561_v19 = vpop.f32.mrb[20].mxu0 }
 0x242   :  { %v706_v20 = vadd.f32 %v1561_v19, %v2043_v10  ;;  %v681_v21 = vpop.f32.mrb[21].mxu0 }
 0x243   :  { %v704_v22 = vadd.f32 %v2043_v10, %v681_v21  ;;  %v1562_v23 = vpop.f32.mrb[22].mxu0 }
 0x244   :  { %720 = vmax.xlane.f32.xlu1 %v706_v20  ;;  %v707_v24 = vadd.f32 %v1562_v23, %v2043_v10  ;;  %v684_v25 = vpop.f32.mrb[23].mxu0 }
 0x245   :  { %716 = vmax.xlane.f32.xlu0 %v704_v22  ;;  %v705_v26 = vadd.f32 %v2043_v10, %v684_v25 }
 0x248   :  { %722 = vmax.xlane.f32.xlu1 %v707_v24 }
 0x249   :  { %718 = vmax.xlane.f32.xlu0 %v705_v26 }
 0x2c1   :  { %v713_v27 = vpop.xlane.xlu1 %712 }
 0x2c2   :  { %v726_v28 = vsub.f32 %v702_v12, %v713_v27  ;;  %v709_v29 = vpop.xlane.xlu0 %708 }
 0x2c3   :  { %v724_v30 = vsub.f32 %v700_v14, %v709_v29 }
 0x2c4   :  { %v736_v33 = vmul.f32 1.442695, %v726_v28 }
 0x2c5   :  { %v732_v31 = vmul.f32 1.442695, %v724_v30  ;;  %v715_v32 = vpop.xlane.xlu1 %714 }
 0x2c6   :  { %v711_v34 = vpop.xlane.xlu0 %710  ;;  %v727_v35 = vsub.f32 %v703_v17, %v715_v32 }
 0x2c7   :  { %1645 = vpow2.f32 %v732_v31  ;;  %v725_v36 = vsub.f32 %v701_v18, %v711_v34 }
 0x2c8   :  { %1647 = vpow2.f32 %v736_v33  ;;  %v738_v38 = vmul.f32 1.442695, %v727_v35 }
 0x2c9   :  { %v734_v37 = vmul.f32 1.442695, %v725_v36 }
 0x2cb   :  { %1649 = vpow2.f32 %v734_v37 }
 0x2cc   :  { %1651 = vpow2.f32 %v738_v38 }
 0x2d1   :  { %v2053_v39 = vpop.eup %1645  ;;  %v721_v40 = vpop.xlane.xlu1 %720 }
 0x2d2   :  { %v730_v41 = vsub.f32 %v706_v20, %v721_v40  ;;  %v717_v42 = vpop.xlane.xlu0 %716  ;;  %748 = vadd.xlane.f32.xlu0 %v2053_v39  ;;  %v2056_v44 = vpop.eup %1647 }
 0x2d3   :  { %v728_v43 = vsub.f32 %v704_v22, %v717_v42 }
 0x2d4   :  { %v744_v45 = vmul.f32 1.442695, %v730_v41 }
 0x2d5   :  { %v2058_v46 = vpop.eup %1649  ;;  %v740_v47 = vmul.f32 1.442695, %v728_v43  ;;  %v723_v48 = vpop.xlane.xlu1 %722 }
 0x2d6   :  { %1653 = vpow2.f32 %v744_v45  ;;  %v731_v49 = vsub.f32 %v707_v24, %v723_v48  ;;  %750 = vadd.xlane.f32.xlu1 %v2058_v46  ;;  %752 = vadd.xlane.f32.xlu0 %v2056_v44  ;;  %v719_v50 = vpop.xlane.xlu0 %718  ;;  %v2062_v53 = vpop.eup %1651 }
 0x2d7   :  { %1655 = vpow2.f32 %v740_v47  ;;  %v729_v51 = vsub.f32 %v705_v26, %v719_v50 }
 0x2d8   :  { %v746_v52 = vmul.f32 1.442695, %v731_v49 }
 0x2d9   :  { %v742_v54 = vmul.f32 1.442695, %v729_v51 }
 0x2da   :  { %1657 = vpow2.f32 %v746_v52  ;;  %754 = vadd.xlane.f32.xlu1 %v2062_v53 }
 0x2db   :  { %1659 = vpow2.f32 %v742_v54 }
 0x2e0   :  { %v2065_v55 = vpop.eup %1653 }
 0x2e1   :  { %v2067_v56 = vpop.eup %1655  ;;  %760 = vadd.xlane.f32.xlu1 %v2065_v55 }
 0x2e2   :  { %756 = vadd.xlane.f32.xlu0 %v2067_v56 }
 0x2e4   :  { %v2071_v57 = vpop.eup %1657 }
 0x2e5   :  { %v2073_v58 = vpop.eup %1659  ;;  %762 = vadd.xlane.f32.xlu1 %v2071_v57 }
 0x2e6   :  { %758 = vadd.xlane.f32.xlu0 %v2073_v58 }
 0x35f   :  { %v749_v8 = vpop.xlane.xlu0 %748 }
 0x360   :  { %1661 = vrcp.f32 %v749_v8 }
 0x363   :  { %v751_v9 = vpop.xlane.xlu1 %750  ;;  %v753_v11 = vpop.xlane.xlu0 %752 }
 0x364   :  { %1663 = vrcp.f32 %v751_v9 }
 0x365   :  { %1665 = vrcp.f32 %v753_v11 }
 0x367   :  { %v755_v12 = vpop.xlane.xlu1 %754 }
 0x368   :  { %1667 = vrcp.f32 %v755_v12 }
 0x36a   :  { %v1662_v13 = vpop.eup %1661 }
 0x36b   :  { %v772_v14 = vmul.f32 %v1662_v13, %v2053_v39 }
 0x36d   :  { %v780_v15 = vrot.slane %v772_v14, 4 }
 0x36e   :  { %v1664_v16 = vpop.eup %1663  ;;  %v761_v17 = vpop.xlane.xlu1 %760 }
 0x36f   :  { %v1666_v18 = vpop.eup %1665  ;;  %1669 = vrcp.f32 %v761_v17  ;;  %v757_v19 = vpop.xlane.xlu0 %756  ;;  %v781_v20 = vadd.f32 %v780_v15, %v772_v14  ;;  %v773_v21 = vmul.f32 %v1664_v16, %v2058_v46 }
 0x370   :  { %1671 = vrcp.f32 %v757_v19  ;;  %v774_v22 = vmul.f32 %v1666_v18, %v2056_v44 }
 0x371   :  { %v782_v23 = vrot.slane %v781_v20, 2  ;;  %v786_v24 = vrot.slane %v773_v21, 4 }
 0x372   :  { %v1668_v25 = vpop.eup %1667  ;;  %v763_v26 = vpop.xlane.xlu1 %762  ;;  %v792_v27 = vrot.slane %v774_v22, 4 }
 0x373   :  { %1673 = vrcp.f32 %v763_v26  ;;  %v759_v28 = vpop.xlane.xlu0 %758  ;;  %v783_v29 = vadd.f32 %v782_v23, %v781_v20  ;;  %v787_v30 = vadd.f32 %v786_v24, %v773_v21  ;;  %v775_v31 = vmul.f32 %v1668_v25, %v2062_v53  ;;  %v1613_v26 = vld [vmem:[#allocation11 + $0x40] sm:$0xff]  }
 0x374   :  { %1675 = vrcp.f32 %v759_v28  ;;  %v793_v32 = vadd.f32 %v792_v27, %v774_v22  ;;  %v1614_v27 = vld [vmem:[#allocation11] sm:$0xff]   ;;  %v1615_v28 = vld [vmem:[#allocation11 + $0x48] sm:$0xff]   ;;  %1441 = vmatprep.subr.bf16.mxu0 %v1613_v26  ;;  %1563 = vmatprep.subr.bf16.mxu1 %v1613_v26 }
 0x375   :  { %v784_v33 = vrot.slane %v783_v29, 1  ;;  %v788_v34 = vrot.slane %v787_v30, 2  ;;  %v798_v35 = vrot.slane %v775_v31, 4  ;;  %1442 = vmatpush3.bf16.msra.mxu0 %v1614_v27  ;;  %1571 = vmatpush3.bf16.msra.mxu1 %v1614_v27 }
 0x376   :  { %v794_v36 = vrot.slane %v793_v32, 2  ;;  %1443 = vmatprep.subr.bf16.mxu0 %v1615_v28  ;;  %1564 = vmatprep.subr.bf16.mxu1 %v1615_v28 }
 0x377   :  { %v785_v37 = vadd.f32 %v784_v33, %v783_v29  ;;  %v789_v38 = vadd.f32 %v788_v34, %v787_v30  ;;  %v799_v39 = vadd.f32 %v798_v35, %v775_v31  ;;  %v1616_v29 = vld [vmem:[#allocation11 + $0x8] sm:$0xff]   ;;  %v1617_v30 = vld [vmem:[#allocation11 + $0x50] sm:$0xff]   ;;  %v2127_v33 = vpop.f32.mrb[16].mxu1 }
 0x378   :  { %v795_v40 = vadd.f32 %v794_v36, %v793_v32  ;;  %v1618_v31 = vld [vmem:[#allocation11 + $0x10] sm:$0xff]   ;;  %v1620_v32 = vld [vmem:[#allocation11 + $0x18] sm:$0xff]   ;;  %v1019_v34 = vpop.f32.mrb[17].mxu1 }
 0x379   :  { %v1670_v41 = vpop.eup %1669  ;;  %v2092_v42 = vadd.f32 %v785_v37, %v2043_v10  ;;  %v790_v43 = vrot.slane %v789_v38, 1  ;;  %v800_v44 = vrot.slane %v799_v39, 2  ;;  %1444 = vmatpush3.bf16.msra.mxu0 %v1616_v29  ;;  %1572 = vmatpush3.bf16.msra.mxu1 %v1616_v29  ;;  %v2129_v35 = vpop.f32.mrb[18].mxu1 }
 0x37a   :  { %v1672_v45 = vpop.eup %1671  ;;  %v796_v46 = vrot.slane %v795_v40, 1  ;;  %v778_v47 = vmul.f32 %v1670_v41, %v2065_v55  ;;  %1445 = vmatprep.subr.bf16.mxu0 %v1617_v30  ;;  %1565 = vmatprep.subr.bf16.mxu1 %v1617_v30  ;;  %v1023_v36 = vpop.f32.mrb[19].mxu1 }
 0x37b   :  { %836 = vmax.xlane.f32.xlu0 %v2092_v42  ;;  %v791_v48 = vadd.f32 %v790_v43, %v789_v38  ;;  %v801_v49 = vadd.f32 %v800_v44, %v799_v39  ;;  %v776_v50 = vmul.f32 %v1672_v45, %v2067_v56  ;;  %v1113_v37 = vpack.c.bf16 %v1023_v36, %v1019_v34 }
 0x37c   :  { %v797_v51 = vadd.f32 %v796_v46, %v795_v40  ;;  %v816_v52 = vrot.slane %v778_v47, 4 }
 0x37d   :  { %v1674_v53 = vpop.eup %1673  ;;  %v2098_v54 = vadd.f32 %v791_v48, %v2043_v10  ;;  %v802_v59 = vrot.slane %v801_v49, 1  ;;  %v804_v60 = vrot.slane %v776_v50, 4  ;;  %1446 = vmatpush3.bf16.msra.mxu0 %v1618_v31  ;;  %1573 = vmatpush3.bf16.msra.mxu1 %v1618_v31 }
 0x37e   :  { %v1676_v61 = vpop.eup %1675  ;;  %v2101_v62 = vadd.f32 %v797_v51, %v2043_v10  ;;  %v817_v63 = vadd.f32 %v816_v52, %v778_v47  ;;  %v779_v55 = vmul.f32 %v1674_v53, %v2071_v57  ;;  %1256 = vmatprep.mubr.bf16.mxu0 %v1113_v37 }
 0x37f   :  { %838 = vmax.xlane.f32.xlu1 %v2098_v54  ;;  %v803_v0 = vadd.f32 %v802_v59, %v801_v49  ;;  %v805_v1 = vadd.f32 %v804_v60, %v776_v50  ;;  %v777_v56 = vmul.f32 %v1676_v61, %v2073_v58 }
 0x380   :  { %840 = vmax.xlane.f32.xlu0 %v2101_v62  ;;  %v818_v2 = vrot.slane %v817_v63, 2  ;;  %v822_v3 = vrot.slane %v779_v55, 4 }
 0x381   :  { %v2108_v4 = vadd.f32 %v803_v0, %v2043_v10  ;;  %v806_v5 = vrot.slane %v805_v1, 2  ;;  %v810_v6 = vrot.slane %v777_v56, 4 }
 0x382   :  { %v819_v7 = vadd.f32 %v818_v2, %v817_v63  ;;  %v823_v8 = vadd.f32 %v822_v3, %v779_v55 }
 0x383   :  { %842 = vmax.xlane.f32.xlu1 %v2108_v4  ;;  %v807_v57 = vadd.f32 %v806_v5, %v805_v1  ;;  %v811_v9 = vadd.f32 %v810_v6, %v777_v56  ;;  %v2153_v5 = vpop.f32.mrb[20].mxu1  ;;  %v1621_v6 = vld [vmem:[#allocation11 + $0x60] sm:$0xff]  }
 0x384   :  { %v820_v11 = vrot.slane %v819_v7, 1  ;;  %v824_v12 = vrot.slane %v823_v8, 2 }
 0x385   :  { %v808_v13 = vrot.slane %v807_v57, 1  ;;  %v812_v14 = vrot.slane %v811_v9, 2 }
 0x386   :  { %v821_v58 = vadd.f32 %v820_v11, %v819_v7  ;;  %v825_v15 = vadd.f32 %v824_v12, %v823_v8  ;;  %v2158_v8 = vpop.f32.mrb[21].mxu1 }
 0x387   :  { %v809_v16 = vadd.f32 %v808_v13, %v807_v57  ;;  %v813_v17 = vadd.f32 %v812_v14, %v811_v9  ;;  %v1622_v57 = vld [vmem:[#allocation11 + $0x20] sm:$0xff]   ;;  %v2161_v9 = vpop.f32.mrb[22].mxu1  ;;  %v1623_v14 = vld [vmem:[#allocation11 + $0x68] sm:$0xff]  }
 0x388   :  { %v2112_v18 = vadd.f32 %v821_v58, %v2043_v10  ;;  %v826_v19 = vrot.slane %v825_v15, 1  ;;  %v2163_v11 = vpop.f32.mrb[23].mxu1 }
 0x389   :  { %v2115_v20 = vadd.f32 %v809_v16, %v2043_v10  ;;  %v814_v21 = vrot.slane %v813_v17, 1  ;;  %v1115_v13 = vpack.c.bf16 %v2163_v11, %v2158_v8  ;;  %v2173_v16 = vpop.f32.mrb[24].mxu1 }
 0x38a   :  { %848 = vmax.xlane.f32.xlu1 %v2112_v18  ;;  %v827_v22 = vadd.f32 %v826_v19, %v825_v15  ;;  %v1624_v15 = vld [vmem:[#allocation11 + $0x28] sm:$0xff]   ;;  %v1626_v19 = vld [vmem:[#allocation11 + $0x30] sm:$0xff]  }
 0x38b   :  { %844 = vmax.xlane.f32.xlu0 %v2115_v20  ;;  %v815_v23 = vadd.f32 %v814_v21, %v813_v17  ;;  %v1625_v17 = vld [vmem:[#allocation11 + $0x70] sm:$0xff]  }
 0x38c   :  { %v2120_v24 = vadd.f32 %v827_v22, %v2043_v10 }
 0x38d   :  { %v2123_v25 = vadd.f32 %v815_v23, %v2043_v10  ;;  %v1619_v10 = vld [vmem:[#allocation11 + $0x58] sm:$0xff]  }
 0x38e   :  { %850 = vmax.xlane.f32.xlu1 %v2120_v24  ;;  %1447 = vmatprep.subr.bf16.mxu0 %v1619_v10  ;;  %v1627_v23 = vld [vmem:[#allocation11 + $0x78] sm:$0xff]  }
 0x38f   :  { %846 = vmax.xlane.f32.xlu0 %v2123_v25  ;;  %1566 = vmatprep.subr.bf16.mxu1 %v1619_v10 }
 0x390   :  { %1448 = vmatpush3.bf16.msra.mxu0 %v1620_v32  ;;  %1574 = vmatpush3.bf16.msra.mxu1 %v1620_v32 }
 0x391   :  { %1449 = vmatprep.subr.bf16.mxu0 %v1621_v6  ;;  %1567 = vmatprep.subr.bf16.mxu1 %v1621_v6 }
 0x394   :  { %1450 = vmatpush3.bf16.msra.mxu0 %v1622_v57  ;;  %1575 = vmatpush3.bf16.msra.mxu1 %v1622_v57 }
 0x395   :  { %1451 = vmatprep.subr.bf16.mxu0 %v1623_v14  ;;  %1568 = vmatprep.subr.bf16.mxu1 %v1623_v14 }
 0x398   :  { %1452 = vmatpush3.bf16.msra.mxu0 %v1624_v15  ;;  %1576 = vmatpush3.bf16.msra.mxu1 %v1624_v15 }
 0x399   :  { %1453 = vmatprep.subr.bf16.mxu0 %v1625_v17  ;;  %1569 = vmatprep.subr.bf16.mxu1 %v1625_v17 }
 0x39c   :  { %1454 = vmatpush3.bf16.msra.mxu0 %v1626_v19  ;;  %1577 = vmatpush3.bf16.msra.mxu1 %v1626_v19 }
 0x39d   :  { %1455 = vmatprep.subr.bf16.mxu0 %v1627_v23  ;;  %1570 = vmatprep.subr.bf16.mxu1 %v1627_v23 }
 0x408   :  { %v837_v38 = vpop.xlane.xlu0 %836 }
 0x409   :  { %v852_v39 = vsub.f32 %v2092_v42, %v837_v38 }
 0x40b   :  { %v860_v40 = vmul.f32 1.442695, %v852_v39 }
 0x40c   :  { %v839_v41 = vpop.xlane.xlu1 %838 }
 0x40d   :  { %1677 = vpow2.f32 %v860_v40  ;;  %v853_v43 = vsub.f32 %v2098_v54, %v839_v41  ;;  %v841_v44 = vpop.xlane.xlu0 %840 }
 0x40e   :  { %v854_v45 = vsub.f32 %v2101_v62, %v841_v44 }
 0x40f   :  { %v862_v46 = vmul.f32 1.442695, %v853_v43 }
 0x410   :  { %v864_v47 = vmul.f32 1.442695, %v854_v45  ;;  %v843_v48 = vpop.xlane.xlu1 %842 }
 0x411   :  { %1679 = vpow2.f32 %v862_v46  ;;  %v855_v49 = vsub.f32 %v2108_v4, %v843_v48 }
 0x412   :  { %1681 = vpow2.f32 %v864_v47 }
 0x413   :  { %v866_v50 = vmul.f32 1.442695, %v855_v49 }
 0x415   :  { %1683 = vpow2.f32 %v866_v50 }
 0x417   :  { %v2135_v51 = vpop.eup %1677  ;;  %v849_v42 = vpop.xlane.xlu1 %848 }
 0x418   :  { %v858_v52 = vsub.f32 %v2112_v18, %v849_v42  ;;  %876 = vadd.xlane.f32.xlu0 %v2135_v51  ;;  %v845_v53 = vpop.xlane.xlu0 %844  ;;  %v2175_v18 = vpop.f32.mrb[25].mxu1 }
 0x419   :  { %v856_v54 = vsub.f32 %v2115_v20, %v845_v53  ;;  %v2177_v20 = vpop.f32.mrb[26].mxu1 }
 0x41a   :  { %v872_v59 = vmul.f32 1.442695, %v858_v52  ;;  %v2179_v21 = vpop.f32.mrb[27].mxu1 }
 0x41b   :  { %v2140_v60 = vpop.eup %1679  ;;  %v868_v61 = vmul.f32 1.442695, %v856_v54  ;;  %v851_v62 = vpop.xlane.xlu1 %850  ;;  %v1117_v22 = vpack.c.bf16 %v2179_v21, %v2175_v18 }
 0x41c   :  { %v2142_v63 = vpop.eup %1681  ;;  %1685 = vpow2.f32 %v872_v59  ;;  %v859_v55 = vsub.f32 %v2120_v24, %v851_v62  ;;  %878 = vadd.xlane.f32.xlu1 %v2140_v60  ;;  %v847_v0 = vpop.xlane.xlu0 %846  ;;  %v1628_v24 = vld [vmem:[#allocation11 + $0x38] sm:$0xff]  }
 0x41d   :  { %1687 = vpow2.f32 %v868_v61  ;;  %880 = vadd.xlane.f32.xlu0 %v2142_v63  ;;  %v857_v1 = vsub.f32 %v2123_v25, %v847_v0  ;;  %v2183_v25 = vpop.f32.mrb[28].mxu1  ;;  %1456 = vmatpush3.bf16.msra.mxu0 %v1628_v24 }
 0x41e   :  { %v874_v56 = vmul.f32 1.442695, %v859_v55  ;;  %v2185_v26 = vpop.f32.mrb[29].mxu1  ;;  %1578 = vmatpush3.bf16.msra.mxu1 %v1628_v24 }
 0x41f   :  { %v2148_v2 = vpop.eup %1683  ;;  %v870_v3 = vmul.f32 1.442695, %v857_v1  ;;  %v1051_v27 = vpop.f32.mrb[30].mxu1 }
 0x420   :  { %1689 = vpow2.f32 %v874_v56  ;;  %882 = vadd.xlane.f32.xlu1 %v2148_v2  ;;  %v2187_v28 = vpop.f32.mrb[31].mxu1 }
 0x421   :  { %1691 = vpow2.f32 %v870_v3  ;;  %v2189_v29 = vpop.f32.mrb[32].mxu1  ;;  %v1119_v31 = vpack.c.bf16 %v2187_v28, %v2185_v26 }
 0x422   :  { %v2191_v30 = vpop.f32.mrb[33].mxu1 }
 0x423   :  { %v2195_v10 = vpop.f32.mrb[34].mxu1 }
 0x424   :  { %v2197_v32 = vpop.f32.mrb[35].mxu1 }
 0x425   :  { %v2199_v34 = vpop.f32.mrb[36].mxu1  ;;  %v1121_v41 = vpack.c.bf16 %v2197_v32, %v2191_v30 }
 0x426   :  { %v2151_v4 = vpop.eup %1685  ;;  %v2201_v36 = vpop.f32.mrb[37].mxu1 }
 0x427   :  { %v2155_v7 = vpop.eup %1687  ;;  %888 = vadd.xlane.f32.xlu1 %v2151_v4  ;;  %v2203_v37 = vpop.f32.mrb[38].mxu1 }
 0x428   :  { %884 = vadd.xlane.f32.xlu0 %v2155_v7  ;;  %v2205_v38 = vpop.f32.mrb[39].mxu1 }
 0x429   :  { %v1077_v39 = vpop.f32.mrb[40].mxu1  ;;  %v1123_v49 = vpack.c.bf16 %v2205_v38, %v2201_v36 }
 0x42a   :  { %v2165_v12 = vpop.eup %1689  ;;  %v1079_v40 = vpop.f32.mrb[41].mxu1 }
 0x42b   :  { %v2169_v58 = vpop.eup %1691  ;;  %890 = vadd.xlane.f32.xlu1 %v2165_v12  ;;  %v1081_v43 = vpop.f32.mrb[42].mxu1 }
 0x42c   :  { %886 = vadd.xlane.f32.xlu0 %v2169_v58  ;;  %v1083_v44 = vpop.f32.mrb[43].mxu1 }
 0x42d   :  { %v1125_v45 = vpack.c.bf16 %v1083_v44, %v1079_v40  ;;  %v1087_v46 = vpop.f32.mrb[44].mxu1 }
 0x42e   :  { %v2209_v47 = vpop.f32.mrb[45].mxu1 }
 0x42f   :  { %v1091_v48 = vpop.f32.mrb[46].mxu1  ;;  %1304 = vmatprep.mubr.bf16.mxu1 %v1125_v45 }
 0x430   :  { %v1093_v50 = vpop.f32.mrb[47].mxu1 }
 0x431   :  { %v1127_v42 = vpack.c.bf16 %v1093_v50, %v2209_v47 }
 0x4a5   :  { %v877_v52 = vpop.xlane.xlu0 %876 }
 0x4a6   :  { %1693 = vrcp.f32 %v877_v52 }
 0x4a9   :  { %v879_v53 = vpop.xlane.xlu1 %878 }
 0x4aa   :  { %1695 = vrcp.f32 %v879_v53  ;;  %v881_v54 = vpop.xlane.xlu0 %880 }
 0x4ab   :  { %1697 = vrcp.f32 %v881_v54 }
 0x4ad   :  { %v883_v59 = vpop.xlane.xlu1 %882 }
 0x4ae   :  { %1699 = vrcp.f32 %v883_v59 }
 0x4b0   :  { %v1694_v61 = vpop.eup %1693 }
 0x4b1   :  { %v900_v62 = vmul.f32 %v1694_v61, %v2135_v51 }
 0x4b3   :  { %v1096_v55 = vmul.f32 %v2127_v33, %v900_v62  ;;  %v1097_v0 = vmul.f32 %v2129_v35, %v900_v62 }
 0x4b4   :  { %v1696_v1 = vpop.eup %1695  ;;  %v889_v56 = vpop.xlane.xlu1 %888 }
 0x4b5   :  { %v1698_v3 = vpop.eup %1697  ;;  %1701 = vrcp.f32 %v889_v56  ;;  %v885_v6 = vpop.xlane.xlu0 %884  ;;  %v1112_v57 = vpack.c.bf16 %v1097_v0, %v1096_v55  ;;  %v901_v14 = vmul.f32 %v1696_v1, %v2140_v60 }
 0x4b6   :  { %v902_v15 = vmul.f32 %v1698_v3, %v2142_v63  ;;  %1703 = vrcp.f32 %v885_v6 }
 0x4b7   :  { %1257 = vmatmul.mubr.bf16.vlgmr.msra.gmra.mrb[24].mxu0 %v1112_v57  ;;  %v1098_v17 = vmul.f32 %v2153_v5, %v901_v14  ;;  %v1099_v51 = vmul.f32 %v2161_v9, %v901_v14 }
 0x4b8   :  { %v1700_v19 = vpop.eup %1699  ;;  %v1100_v33 = vmul.f32 %v2173_v16, %v902_v15  ;;  %v1101_v35 = vmul.f32 %v2177_v20, %v902_v15  ;;  %v891_v23 = vpop.xlane.xlu1 %890  ;;  %1264 = vmatprep.mubr.bf16.mxu0 %v1115_v13 }
 0x4b9   :  { %v903_v60 = vmul.f32 %v1700_v19, %v2148_v2  ;;  %1705 = vrcp.f32 %v891_v23  ;;  %v887_v63 = vpop.xlane.xlu0 %886  ;;  %v1114_v24 = vpack.c.bf16 %v1099_v51, %v1098_v17 }
 0x4ba   :  { %v1116_v40 = vpack.c.bf16 %v1101_v35, %v1100_v33  ;;  %1707 = vrcp.f32 %v887_v63 }
 0x4bb   :  { %v1102_v5 = vmul.f32 %v2183_v25, %v903_v60  ;;  %v1103_v9 = vmul.f32 %v1051_v27, %v903_v60 }
 0x4bd   :  { %v1118_v44 = vpack.c.bf16 %v1103_v9, %v1102_v5 }
 0x4bf   :  { %v1702_v45 = vpop.eup %1701  ;;  %1265 = vmatmul.mubr.bf16.gmra.mrb[28].mxu0 %v1114_v24 }
 0x4c0   :  { %v1704_v16 = vpop.eup %1703  ;;  %v906_v20 = vmul.f32 %v1702_v45, %v2151_v4  ;;  %1272 = vmatprep.mubr.bf16.mxu0 %v1117_v22 }
 0x4c1   :  { %v904_v2 = vmul.f32 %v1704_v16, %v2155_v7 }
 0x4c2   :  { %v1108_v8 = vmul.f32 %v1077_v39, %v906_v20  ;;  %v1109_v11 = vmul.f32 %v1081_v43, %v906_v20 }
 0x4c3   :  { %v1706_v13 = vpop.eup %1705  ;;  %v1104_v47 = vmul.f32 %v2189_v29, %v904_v2  ;;  %v1105_v25 = vmul.f32 %v2195_v10, %v904_v2 }
 0x4c4   :  { %v1708_v27 = vpop.eup %1707  ;;  %v1124_v50 = vpack.c.bf16 %v1109_v11, %v1108_v8  ;;  %v907_v52 = vmul.f32 %v1706_v13, %v2165_v12 }
 0x4c5   :  { %v1120_v53 = vpack.c.bf16 %v1105_v25, %v1104_v47  ;;  %v905_v4 = vmul.f32 %v1708_v27, %v2169_v58 }
 0x4c6   :  { %v1110_v54 = vmul.f32 %v1087_v46, %v907_v52  ;;  %v1111_v59 = vmul.f32 %v1091_v48, %v907_v52  ;;  %1305 = vmatmul.mubr.bf16.vlgmr.msra.gmra.mrb[48].mxu1 %v1124_v50 }
 0x4c7   :  { %v1106_v18 = vmul.f32 %v2199_v34, %v905_v4  ;;  %v1107_v7 = vmul.f32 %v2203_v37, %v905_v4  ;;  %1273 = vmatmul.mubr.bf16.gmra.mrb[32].mxu0 %v1116_v40  ;;  %1312 = vmatprep.mubr.bf16.mxu1 %v1127_v42 }
 0x4c8   :  { %v1126_v21 = vpack.c.bf16 %v1111_v59, %v1110_v54  ;;  %1280 = vmatprep.mubr.bf16.mxu0 %v1119_v31 }
 0x4c9   :  { %v1122_v22 = vpack.c.bf16 %v1107_v7, %v1106_v18 }
 0x4ce   :  { %1313 = vmatmul.mubr.bf16.gmra.mrb[52].mxu1 %v1126_v21 }
 0x4cf   :  { %1281 = vmatmul.mubr.bf16.gmra.mrb[36].mxu0 %v1118_v44 }
 0x4d0   :  { %1288 = vmatprep.mubr.bf16.mxu0 %v1121_v41 }
 0x4d7   :  { %1289 = vmatmul.mubr.bf16.gmra.mrb[40].mxu0 %v1120_v53 }
 0x4d8   :  { %1296 = vmatprep.mubr.bf16.mxu0 %v1123_v49 }
 0x4df   :  { %1297 = vmatmul.mubr.bf16.gmra.mrb[44].mxu0 %v1122_v22 }
 0x58a   :  { %v1457_v12 = vpop.f32.mrb[24].mxu0 }
 0x58b   :  { %v1458_v58 = vpop.f32.mrb[25].mxu0 }
 0x58c   :  { %v1459_v29 = vadd.f32 %v1458_v58, %v1457_v12  ;;  %v1460_v10 = vpop.f32.mrb[26].mxu0 }
 0x58d   :  { %v1461_v34 = vpop.f32.mrb[27].mxu0 }
 0x58e   :  { %1321 = vst.msk [vmem:[#allocation13] sm:$0xff] %vm614_vm3, %v1459_v29  ;;  %v1462_v26 = vadd.f32 %v1461_v34, %v1460_v10 }
 0x590   :  { %1322 = vst.msk [vmem:[#allocation13 + $0x8] sm:$0xff] %vm614_vm3, %v1462_v26 }
 0x592   :  { %v1463_v28 = vpop.f32.mrb[28].mxu0 }
 0x593   :  { %v1464_v31 = vpop.f32.mrb[29].mxu0 }
 0x594   :  { %v1465_v30 = vadd.f32 %v1464_v31, %v1463_v28  ;;  %v1466_v32 = vpop.f32.mrb[30].mxu0 }
 0x595   :  { %v1467_v37 = vpop.f32.mrb[31].mxu0 }
 0x596   :  { %1323 = vst.msk [vmem:[#allocation13 + $0x10] sm:$0xff] %vm614_vm3, %v1465_v30  ;;  %v1468_v36 = vadd.f32 %v1467_v37, %v1466_v32 }
 0x598   :  { %1324 = vst.msk [vmem:[#allocation13 + $0x18] sm:$0xff] %vm614_vm3, %v1468_v36 }
 0x599   :  { %v1493_v38 = vpop.f32.mrb[48].mxu1 }
 0x59a   :  { %v1469_v39 = vpop.f32.mrb[32].mxu0  ;;  %v1494_v41 = vpop.f32.mrb[49].mxu1 }
 0x59b   :  { %v1495_v43 = vadd.f32 %v1494_v41, %v1493_v38  ;;  %v1470_v46 = vpop.f32.mrb[33].mxu0  ;;  %v1496_v48 = vpop.f32.mrb[50].mxu1 }
 0x59c   :  { %v1471_v49 = vadd.f32 %v1470_v46, %v1469_v39  ;;  %v1472_v42 = vpop.f32.mrb[34].mxu0  ;;  %v1497_v61 = vpop.f32.mrb[51].mxu1 }
 0x59d   :  { %1333 = vst.msk [vmem:[#allocation13 + $0x60] sm:$0xff] %vm614_vm3, %v1495_v43  ;;  %v1498_v62 = vadd.f32 %v1497_v61, %v1496_v48  ;;  %v1473_v55 = vpop.f32.mrb[35].mxu0 }
 0x59e   :  { %1325 = vst.msk [vmem:[#allocation13 + $0x20] sm:$0xff] %vm614_vm3, %v1471_v49  ;;  %v1474_v0 = vadd.f32 %v1473_v55, %v1472_v42 }
 0x59f   :  { %1334 = vst.msk [vmem:[#allocation13 + $0x68] sm:$0xff] %vm614_vm3, %v1498_v62 }
 0x5a0   :  { %1326 = vst.msk [vmem:[#allocation13 + $0x28] sm:$0xff] %vm614_vm3, %v1474_v0 }
 0x5a1   :  { %v1499_v1 = vpop.f32.mrb[52].mxu1 }
 0x5a2   :  { %v1475_v56 = vpop.f32.mrb[36].mxu0  ;;  %v1500_v3 = vpop.f32.mrb[53].mxu1 }
 0x5a3   :  { %v1501_v6 = vadd.f32 %v1500_v3, %v1499_v1  ;;  %v1476_v57 = vpop.f32.mrb[37].mxu0  ;;  %v1502_v14 = vpop.f32.mrb[54].mxu1 }
 0x5a4   :  { %v1477_v15 = vadd.f32 %v1476_v57, %v1475_v56  ;;  %v1478_v17 = vpop.f32.mrb[38].mxu0  ;;  %v1503_v51 = vpop.f32.mrb[55].mxu1 }
 0x5a5   :  { %1335 = vst.msk [vmem:[#allocation13 + $0x70] sm:$0xff] %vm614_vm3, %v1501_v6  ;;  %v1504_v19 = vadd.f32 %v1503_v51, %v1502_v14  ;;  %v1479_v33 = vpop.f32.mrb[39].mxu0 }
 0x5a6   :  { %1327 = vst.msk [vmem:[#allocation13 + $0x30] sm:$0xff] %vm614_vm3, %v1477_v15  ;;  %v1480_v35 = vadd.f32 %v1479_v33, %v1478_v17 }
 0x5a7   :  { %1336 = vst.msk [vmem:[#allocation13 + $0x78] sm:$0xff] %vm614_vm3, %v1504_v19 }
 0x5a8   :  { %1328 = vst.msk [vmem:[#allocation13 + $0x38] sm:$0xff] %vm614_vm3, %v1480_v35 }
 0x5aa   :  { %v1481_v23 = vpop.f32.mrb[40].mxu0 }
 0x5ab   :  { %v1482_v60 = vpop.f32.mrb[41].mxu0 }
 0x5ac   :  { %v1483_v63 = vadd.f32 %v1482_v60, %v1481_v23  ;;  %v1484_v24 = vpop.f32.mrb[42].mxu0 }
 0x5ad   :  { %v1485_v40 = vpop.f32.mrb[43].mxu0 }
 0x5ae   :  { %1329 = vst.msk [vmem:[#allocation13 + $0x40] sm:$0xff] %vm614_vm3, %v1483_v63  ;;  %v1486_v5 = vadd.f32 %v1485_v40, %v1484_v24 }
 0x5b0   :  { %1330 = vst.msk [vmem:[#allocation13 + $0x48] sm:$0xff] %vm614_vm3, %v1486_v5 }
 0x5b2   :  { %v1487_v9 = vpop.f32.mrb[44].mxu0 }
 0x5b3   :  { %v1488_v44 = vpop.f32.mrb[45].mxu0 }
 0x5b4   :  { %v1489_v45 = vadd.f32 %v1488_v44, %v1487_v9  ;;  %v1490_v16 = vpop.f32.mrb[46].mxu0 }
 0x5b5   :  { %v1491_v20 = vpop.f32.mrb[47].mxu0 }
 0x5b6   :  { %1331 = vst.msk [vmem:[#allocation13 + $0x50] sm:$0xff] %vm614_vm3, %v1489_v45  ;;  %v1492_v2 = vadd.f32 %v1491_v20, %v1490_v16 }
 0x5b8   :  { %1332 = vst.msk [vmem:[#allocation13 + $0x58] sm:$0xff] %vm614_vm3, %v1492_v2 }
 0x5b9   :  { %1852 = shalt.err (!%p1849_p10)
}
 0x5ba   :  { %s1853_s1 = scalar_lea.hbm %s2282_s6, 2048 }
 0x5bb   :  { %p1854_p11 = scmp.ne.s32.totalorder %s2282_s6, %s1853_s1  ;;  %p1857_p12 = scmp.lt.u32.totalorder %s1853_s1, %s2282_s6 }
 0x5bd   :  { %p1859_p13 = pnand %p1857_p12, %p1854_p11 }
 0x5bf   :  { %1862 = shalt.err (!%p1859_p13)
}
 0x5c0   :  { %s1886_s27 = smov 128   ;;  %s1887_s28 = smov 8  }
 0x5c1   :  { %1348 = dma.vmem_to_hbm [thread:$0]  %s1343_s9, 2048, %s2282_s6, [#allocation4], %s1886_s27, %s1886_s27, %s1887_s28  }
 0x5c2   :  { %1871 = dma.done.wait [#allocation4], 2048  }
 0x5c3   :  { %1872 = vsyncadd [#allocation4], 4294965248 }
 0x5c4   :  { %1352 = vsyncpa [#allocation3], 1 }
 0x5c5   :  { %1353 = vsyncpa [#allocation6], 1 }
 0x5c6   :  { %1354 = vsyncpa [#allocation9], 1 }
 0x5c7   :  { %1355 = vsyncpa [#allocation12], 1 }
 0x5c8   :  { %1356 = vsyncpa [#allocation4], 1 }

</bundles_post_ra>
